<compile_context>
chip_gen: v7x
topology: tpu7x:2x2x1
jax: 0.10.0
libtpu: 0.0.40
codegen_flags: <defaults>
</compile_context>

<pallas_src>
import math

import jax
import jax.numpy as jnp
from jax.experimental import pallas as pl
from jax.experimental.pallas import tpu as pltpu

# ---------------- small, forward-consistent sizes ----------------
B      = 2            # batch
L_OBS  = 6            # lowdim_obs_dim
N_ACT  = 4            # num_actions
D_TOK  = 32           # token_dim (language-model embedding dim)
T_ACT  = 8            # action horizon (noisy action tokens)
N_OBS  = 16           # obs_features sequence length (encoder side)
D_FFN  = 4 * D_TOK    # decoder FFN width (=128, also the lane-dense pad width
                      # for the action-head output)
EPS    = 1e-5

assert D_FFN % 128 == 0   # keeps FFN activations and the head output lane-dense


# =================================================================
# Single fused kernel: adapter -> decoder layer -> action head
# (one batch element per grid step; weights resident across the grid)
# =================================================================
def florence_pi0_kernel(enc_ref, state_ref, act_ref, t_ref, freqs_ref, sbias_ref,
                        w_ld_ref, w_ae_ref, w_qkv_ref, w_ckv_ref, w_sq_ref,
                        w_wide_ref, w2_ref, vecs_ref, b_wide_ref, out_ref):
    f32, bf16 = jnp.float32, jnp.bfloat16

    enc = enc_ref[...]                                 # [1, N, D]
    _, N, D = enc.shape
    enc = enc.reshape(N, D)
    act_in = act_ref[...]                              # [1, T, A]
    T = act_in.shape[1]
    actions = act_in.reshape(T, act_in.shape[2])       # [T, A]
    state = state_ref[...].reshape(1, state_ref.shape[-1])   # [1, L]
    m_pad, ffn = out_ref.shape                         # [16, 128]

    # ---- packed parameter views (lane-dense slabs, static zero-cost slices) ----
    vecs = vecs_ref[...]                               # [11, D]  f32
    b_ld, b_ae = vecs[0:1, :], vecs[1:2, :]
    b_m1, b_m2, b2 = vecs[2:3, :], vecs[3:4, :], vecs[4:5, :]
    g1, be1 = vecs[5:6, :], vecs[6:7, :]
    g2, be2 = vecs[7:8, :], vecs[8:9, :]
    g3, be3 = vecs[9:10, :], vecs[10:11, :]
    w_sq = w_sq_ref[...]                               # [D, 6D]  bf16 slab
    wo, cq, co = w_sq[:, 0:D], w_sq[:, D:2 * D], w_sq[:, 2 * D:3 * D]
    w_m1a, w_m1b = w_sq[:, 3 * D:4 * D], w_sq[:, 4 * D:5 * D]
    w_m2 = w_sq[:, 5 * D:6 * D]
    w_wide = w_wide_ref[...]                           # [D, 2F]  bf16 slab
    w1, w_ad = w_wide[:, :ffn], w_wide[:, ffn:]
    b_wide = b_wide_ref[...]                           # [2, F]   f32
    b1, b_ad = b_wide[0:1, :], b_wide[1:2, :]

    def mm(a, b):                       # bf16 MXU matmul, f32 accumulation
        return jnp.dot(a.astype(bf16), b.astype(bf16),
                       preferred_element_type=f32)

    def mm_t(a, b):                     # a @ b.T without materializing b.T
        return jax.lax.dot_general(a.astype(bf16), b.astype(bf16),
                                   (((1,), (1,)), ((), ())),
                                   preferred_element_type=f32)

    # ---------------- adapter (flat 2-D dots) ----------------
    low = mm(state, w_ld_ref[...]) + b_ld                         # [1, D]
    act = mm(actions, w_ae_ref[...]) + b_ae                       # [T, D]

    # SinusoidalPosEmb (freqs = exp(-i*log(1e4)/(half-1)) precomputed host-side)
    ang = t_ref[...].reshape(1, 1) * freqs_ref[...]               # [1, D/2]
    time_emb = jnp.concatenate([jnp.sin(ang), jnp.cos(ang)], axis=-1)  # [1, D]

    # action_timestep_mixer: Linear(2D, D) -> SiLU -> Linear(D, D).
    # w_m1 split into its (action | time) halves: no [T, 2D] concat, the
    # timestep projection runs once per batch element.
    h = mm(act, w_m1a) + mm(time_emb, w_m1b) + b_m1               # [T, D]
    h = h * jax.nn.sigmoid(h)                                     # SiLU (f32)
    h = mm(h, w_m2) + b_m2                                        # [T, D]

    # decoder_inputs_embeds = [low_dim ; mixed actions ; zero pad] -> [m_pad, D]
    x = jnp.concatenate([low, h, jnp.zeros((m_pad - 1 - T, D), f32)], axis=0)

    # ---------------- synthetic decoder layer ----------------
    # TODO(synk): self.net.language_model (Florence-2 / BART encoder-decoder)
    # is replaced by one BART-style decoder layer with encoder = identity.
    def layer_norm(y, g, b):
        mu = jnp.mean(y, axis=-1, keepdims=True)
        ms = jnp.mean(jnp.square(y), axis=-1, keepdims=True)   # independent reduce
        return (y - mu) * jax.lax.rsqrt(ms - jnp.square(mu) + EPS) * g + b

    def softmax(s):
        m = jnp.max(s, axis=-1, keepdims=True)
        e = jnp.exp(s - m)
        return e * pl.reciprocal(jnp.sum(e, axis=-1, keepdims=True), approx=True)

    # causal self-attention (single head); Q|K|V one fused matmul; 1/sqrt(D)
    # pre-folded into the Q weight columns host-side.
    qkv = mm(x, w_qkv_ref[...])                                   # [m_pad, 3D]
    q, k, v = qkv[:, :D], qkv[:, D:2 * D], qkv[:, 2 * D:]
    a = softmax(mm_t(q, k) + sbias_ref[...])                      # [m_pad, m_pad]
    sa = mm(a, v)
    x = layer_norm(x + mm(sa, wo), g1, be1)

    # cross-attention to obs features (one batch element per step -> no mask)
    kv = mm(enc, w_ckv_ref[...])                                  # [N, 2D]
    kc, vc = kv[:, :D], kv[:, D:]
    ac = softmax(mm_t(mm(x, cq), kc))                             # [m_pad, N]
    ca = mm(ac, vc)
    x = layer_norm(x + mm(ca, co), g2, be2)

    # feed-forward
    ff = mm(x, w1) + b1                                           # [m_pad, F]
    # TODO(synk): Florence-2/BART uses exact (erf) GELU; tanh approximation is
    # kept for this synthetic stand-in layer (guaranteed Mosaic lowering).
    ff = jax.nn.gelu(ff, approximate=True)
    x = layer_norm(x + mm(ff, w2_ref[...]) + b2, g3, be3)

    # action_decoder head, lane-padded to 128 columns: full-lane unmasked store;
    # the wrapper slices rows 1..T and lanes :N_ACT.
    out_ref[...] = mm(x, w_ad) + b_ad


# =================================================================
# Parameter init (module-shaped) + host-side packing
# =================================================================
def init_params(key):
    ks = iter(jax.random.split(key, 32))

    def w(shape, fan_in):
        return jax.random.normal(next(ks), shape, jnp.float32) / math.sqrt(fan_in)

    z = lambda *s: jnp.zeros(s, jnp.float32)
    o = lambda *s: jnp.ones(s, jnp.float32)

    p = {}
    p['w_ld'], p['b_ld'] = w((L_OBS, D_TOK), L_OBS), z(1, D_TOK)
    p['w_ae'], p['b_ae'] = w((N_ACT, D_TOK), N_ACT), z(1, D_TOK)
    p['w_m1'], p['b_m1'] = w((2 * D_TOK, D_TOK), 2 * D_TOK), z(1, D_TOK)
    p['w_m2'], p['b_m2'] = w((D_TOK, D_TOK), D_TOK), z(1, D_TOK)
    for name in ('wq', 'wk', 'wv', 'wo', 'cq', 'ck', 'cv', 'co'):
        p[name] = w((D_TOK, D_TOK), D_TOK)
    p['w1'], p['b1'] = w((D_TOK, D_FFN), D_TOK), z(1, D_FFN)
    p['w2'], p['b2'] = w((D_FFN, D_TOK), D_FFN), z(1, D_TOK)
    for name in ('g1', 'g2', 'g3'):
        p[name] = o(1, D_TOK)
    for name in ('be1', 'be2', 'be3'):
        p[name] = z(1, D_TOK)
    p['w_ad'], p['b_ad'] = w((D_TOK, N_ACT), D_TOK), z(1, N_ACT)
    return p


def pack_params(p):
    """Pack the ~25 small tensors into a few lane-dense bf16/f32 kernel inputs."""
    D, F = D_TOK, D_FFN
    bf16 = jnp.bfloat16
    scale = 1.0 / math.sqrt(D)                       # folded into Q projections
    w_qkv = jnp.concatenate([p['wq'] * scale, p['wk'], p['wv']], axis=1)  # [D,3D]
    w_ckv = jnp.concatenate([p['ck'], p['cv']], axis=1)                   # [D,2D]
    # lane-dense [D, 6D] slab (contiguous DMA, zero-cost static slices in-kernel)
    w_sq = jnp.concatenate([p['wo'], p['cq'] * scale, p['co'],
                            p['w_m1'][:D, :],        # action-embedding half
                            p['w_m1'][D:, :],        # timestep-embedding half
                            p['w_m2']], axis=1)                            # [D,6D]
    w_ad_pad = jnp.pad(p['w_ad'], ((0, 0), (0, F - N_ACT)))
    w_wide = jnp.concatenate([p['w1'], w_ad_pad], axis=1)                  # [D,2F]
    vecs = jnp.concatenate([p['b_ld'], p['b_ae'], p['b_m1'], p['b_m2'], p['b2'],
                            p['g1'], p['be1'], p['g2'], p['be2'],
                            p['g3'], p['be3']], axis=0)                    # [11,D]
    b_wide = jnp.concatenate([p['b1'],
                              jnp.pad(p['b_ad'], ((0, 0), (0, F - N_ACT)))],
                             axis=0)                                       # [2,F]
    return {'w_ld': p['w_ld'].astype(bf16), 'w_ae': p['w_ae'].astype(bf16),
            'w_qkv': w_qkv.astype(bf16), 'w_ckv': w_ckv.astype(bf16),
            'w_sq': w_sq.astype(bf16), 'w_wide': w_wide.astype(bf16),
            'w2': p['w2'].astype(bf16), 'vecs': vecs, 'b_wide': b_wide}


# =================================================================
# Forward wrapper
# =================================================================
def florence_pi0_forward(packed, batch):
    """Mirrors FlorencePi0Net.forward on the precomputed-obs_features path."""
    obs_features = batch['obs_features']
    # TODO(synk): the `obs_features is None` branch (Florence-2 vision tower,
    # tokenizer prompt embeds, _merge_input_ids_with_image_features) needs the
    # pretrained checkpoint and is not reproducible in-script.
    inputs_embeds = obs_features
    Bq, N, D = inputs_embeds.shape

    state = batch['observation.state'].reshape(Bq, 1, -1).astype(jnp.float32)
    actions = batch['noisy_inputs']['action'].astype(jnp.float32)
    T = actions.shape[1]
    m_pad = max(8, ((T + 1 + 7) // 8) * 8)            # sublane-aligned token rows

    t = batch['timesteps'].reshape(Bq, 1, 1).astype(jnp.float32)
    half = D // 2
    freqs = jnp.exp(jnp.arange(half, dtype=jnp.float32)
                    * (-math.log(10000.0) / (half - 1)))[None, :]

    # Shared causal additive bias (0 = attend, -big = masked). Padded rows
    # attend causally too (harmless; their outputs are sliced off).
    neg = float(jnp.finfo(jnp.float32).min) / 2.0
    pos = jnp.arange(m_pad, dtype=jnp.int32)
    self_bias = jnp.where(pos[None, :] <= pos[:, None], 0.0, neg
                          ).astype(jnp.float32)                   # [m_pad, m_pad]

    args = (inputs_embeds, state, actions, t, freqs, self_bias,
            packed['w_ld'], packed['w_ae'], packed['w_qkv'], packed['w_ckv'],
            packed['w_sq'], packed['w_wide'], packed['w2'], packed['vecs'],
            packed['b_wide'])

    def elem_spec(shape):                 # one batch element per grid step
        nd = len(shape)
        return pl.BlockSpec((1,) + tuple(shape[1:]),
                            lambda b, _nd=nd: (b,) + (0,) * (_nd - 1))

    def const_spec(shape):                # resident in VMEM across all steps
        nd = len(shape)
        return pl.BlockSpec(tuple(shape), lambda b, _nd=nd: (0,) * _nd)

    in_specs = ([elem_spec(a.shape) for a in args[:4]]
                + [const_spec(a.shape) for a in args[4:]])

    out_shape = jax.ShapeDtypeStruct((Bq * m_pad, D_FFN), jnp.float32)
    out_spec = pl.BlockSpec((m_pad, D_FFN), lambda b: (b, 0))

    # Advisory cost estimate so XLA can schedule around the custom call.
    flops = 2 * Bq * (L_OBS * D + T * N_ACT * D + (2 * T + 1) * D * D
                      + m_pad * 3 * D * D + 2 * m_pad * m_pad * D
                      + m_pad * D * D + N * 2 * D * D + m_pad * D * D
                      + 2 * m_pad * N * D + m_pad * D * D
                      + 3 * m_pad * D * D_FFN)
    transcend = Bq * (D + T * D + m_pad * m_pad + m_pad * N + 2 * m_pad
                      + m_pad * D_FFN)
    bytes_acc = (sum(int(a.size) * a.dtype.itemsize for a in args)
                 + Bq * m_pad * D_FFN * 4)

    out = pl.pallas_call(
        florence_pi0_kernel,
        grid=(Bq,),
        in_specs=in_specs,
        out_specs=out_spec,
        out_shape=out_shape,
        compiler_params=pltpu.CompilerParams(
            dimension_semantics=("parallel",)),
        cost_estimate=pl.CostEstimate(flops=flops, transcendentals=transcend,
                                      bytes_accessed=bytes_acc),
    )(*args)

    # rows 1..T of each per-element tile == decoder_outputs[:, -T:]; lanes :N_ACT
    pred = out.reshape(Bq, m_pad, D_FFN)[:, 1:1 + T, :N_ACT]
    return {'action': pred}, obs_features


if __name__ == "__main__":
    key = jax.random.PRNGKey(0)
    k_param, k1, k2, k3, k4 = jax.random.split(key, 5)
    packed = pack_params(init_params(k_param))

    batch = {
        'obs_features': jax.random.normal(k1, (B, N_OBS, D_TOK), jnp.float32),
        'observation.state': jax.random.normal(k2, (B, L_OBS), jnp.float32),
        'noisy_inputs': {'action': jax.random.normal(k3, (B, T_ACT, N_ACT),
                                                     jnp.float32)},
        'timesteps': jax.random.uniform(k4, (B,), jnp.float32, 0.0, 100.0),
    }

    pred_noise, obs_features = florence_pi0_forward(packed, batch)
    jax.block_until_ready(pred_noise['action'])

    assert pred_noise['action'].shape == (B, T_ACT, N_ACT)
    assert pred_noise['action'].dtype == jnp.float32
    assert obs_features.shape == (B, N_OBS, D_TOK)
    print("KERNEL_OK")
</pallas_src>

<mosaic_0001>
module attributes {stable_mosaic.version = 11 : i64} {
  func.func @florence_pi0_kernel(%arg0: i32, %arg1: memref<1x16x32xf32, #tpu.memory_space<vmem>>, %arg2: memref<1x1x6xf32, #tpu.memory_space<vmem>>, %arg3: memref<1x8x4xf32, #tpu.memory_space<vmem>>, %arg4: memref<1x1x1xf32, #tpu.memory_space<vmem>>, %arg5: memref<1x16xf32, #tpu.memory_space<vmem>>, %arg6: memref<16x16xf32, #tpu.memory_space<vmem>>, %arg7: memref<6x32xbf16, #tpu.memory_space<vmem>>, %arg8: memref<4x32xbf16, #tpu.memory_space<vmem>>, %arg9: memref<32x96xbf16, #tpu.memory_space<vmem>>, %arg10: memref<32x64xbf16, #tpu.memory_space<vmem>>, %arg11: memref<32x192xbf16, #tpu.memory_space<vmem>>, %arg12: memref<32x256xbf16, #tpu.memory_space<vmem>>, %arg13: memref<128x32xbf16, #tpu.memory_space<vmem>>, %arg14: memref<11x32xf32, #tpu.memory_space<vmem>>, %arg15: memref<2x128xf32, #tpu.memory_space<vmem>>, %arg16: memref<16x128xf32, #tpu.memory_space<vmem>>) attributes {dimension_semantics = [#tpu.dimension_semantics<parallel>], iteration_bounds = array<i64: 2>, scalar_prefetch = 0 : i64, scratch_operands = 0 : i64, tpu.core_type = #tpu.core_type<tc>, window_params = [{transform_indices = @transform_0, window_bounds = array<i64: 1, 16, 32>}, {transform_indices = @transform_1, window_bounds = array<i64: 1, 1, 6>}, {transform_indices = @transform_2, window_bounds = array<i64: 1, 8, 4>}, {transform_indices = @transform_3, window_bounds = array<i64: 1, 1, 1>}, {pipeline_mode = #tpu.pipeline_mode<synchronous>, transform_indices = @transform_4, window_bounds = array<i64: 1, 16>}, {pipeline_mode = #tpu.pipeline_mode<synchronous>, transform_indices = @transform_5, window_bounds = array<i64: 16, 16>}, {pipeline_mode = #tpu.pipeline_mode<synchronous>, transform_indices = @transform_6, window_bounds = array<i64: 6, 32>}, {pipeline_mode = #tpu.pipeline_mode<synchronous>, transform_indices = @transform_7, window_bounds = array<i64: 4, 32>}, {pipeline_mode = #tpu.pipeline_mode<synchronous>, transform_indices = @transform_8, window_bounds = array<i64: 32, 96>}, {pipeline_mode = #tpu.pipeline_mode<synchronous>, transform_indices = @transform_9, window_bounds = array<i64: 32, 64>}, {pipeline_mode = #tpu.pipeline_mode<synchronous>, transform_indices = @transform_10, window_bounds = array<i64: 32, 192>}, {pipeline_mode = #tpu.pipeline_mode<synchronous>, transform_indices = @transform_11, window_bounds = array<i64: 32, 256>}, {pipeline_mode = #tpu.pipeline_mode<synchronous>, transform_indices = @transform_12, window_bounds = array<i64: 128, 32>}, {pipeline_mode = #tpu.pipeline_mode<synchronous>, transform_indices = @transform_13, window_bounds = array<i64: 11, 32>}, {pipeline_mode = #tpu.pipeline_mode<synchronous>, transform_indices = @transform_14, window_bounds = array<i64: 2, 128>}, {transform_indices = @transform_15, window_bounds = array<i64: 16, 128>}]} {
    %c0 = arith.constant 0 : index
    %c0_0 = arith.constant 0 : index
    %c0_1 = arith.constant 0 : index
    %0 = vector.load %arg1[%c0, %c0_0, %c0_1] : memref<1x16x32xf32, #tpu.memory_space<vmem>>, vector<1x16x32xf32>
    %1 = vector.shape_cast %0 : vector<1x16x32xf32> to vector<16x32xf32>
    %c0_2 = arith.constant 0 : index
    %c0_3 = arith.constant 0 : index
    %c0_4 = arith.constant 0 : index
    %2 = vector.load %arg3[%c0_2, %c0_3, %c0_4] : memref<1x8x4xf32, #tpu.memory_space<vmem>>, vector<1x8x4xf32>
    %3 = vector.shape_cast %2 : vector<1x8x4xf32> to vector<8x4xf32>
    %c0_5 = arith.constant 0 : index
    %c0_6 = arith.constant 0 : index
    %c0_7 = arith.constant 0 : index
    %4 = vector.load %arg2[%c0_5, %c0_6, %c0_7] : memref<1x1x6xf32, #tpu.memory_space<vmem>>, vector<1x1x6xf32>
    %5 = vector.shape_cast %4 : vector<1x1x6xf32> to vector<1x6xf32>
    %c0_8 = arith.constant 0 : index
    %c0_9 = arith.constant 0 : index
    %6 = vector.load %arg14[%c0_8, %c0_9] : memref<11x32xf32, #tpu.memory_space<vmem>>, vector<11x32xf32>
    %7 = vector.extract_strided_slice %6 {offsets = [0, 0], sizes = [1, 32], strides = [1, 1]} : vector<11x32xf32> to vector<1x32xf32>
    %8 = vector.extract_strided_slice %6 {offsets = [1, 0], sizes = [1, 32], strides = [1, 1]} : vector<11x32xf32> to vector<1x32xf32>
    %9 = vector.extract_strided_slice %6 {offsets = [2, 0], sizes = [1, 32], strides = [1, 1]} : vector<11x32xf32> to vector<1x32xf32>
    %10 = vector.extract_strided_slice %6 {offsets = [3, 0], sizes = [1, 32], strides = [1, 1]} : vector<11x32xf32> to vector<1x32xf32>
    %11 = vector.extract_strided_slice %6 {offsets = [4, 0], sizes = [1, 32], strides = [1, 1]} : vector<11x32xf32> to vector<1x32xf32>
    %12 = vector.extract_strided_slice %6 {offsets = [5, 0], sizes = [1, 32], strides = [1, 1]} : vector<11x32xf32> to vector<1x32xf32>
    %13 = vector.extract_strided_slice %6 {offsets = [6, 0], sizes = [1, 32], strides = [1, 1]} : vector<11x32xf32> to vector<1x32xf32>
    %14 = vector.extract_strided_slice %6 {offsets = [7, 0], sizes = [1, 32], strides = [1, 1]} : vector<11x32xf32> to vector<1x32xf32>
    %15 = vector.extract_strided_slice %6 {offsets = [8, 0], sizes = [1, 32], strides = [1, 1]} : vector<11x32xf32> to vector<1x32xf32>
    %16 = vector.extract_strided_slice %6 {offsets = [9, 0], sizes = [1, 32], strides = [1, 1]} : vector<11x32xf32> to vector<1x32xf32>
    %17 = vector.extract_strided_slice %6 {offsets = [10, 0], sizes = [1, 32], strides = [1, 1]} : vector<11x32xf32> to vector<1x32xf32>
    %c0_10 = arith.constant 0 : index
    %c0_11 = arith.constant 0 : index
    %18 = vector.load %arg11[%c0_10, %c0_11] : memref<32x192xbf16, #tpu.memory_space<vmem>>, vector<32x192xbf16>
    %19 = vector.extract_strided_slice %18 {offsets = [0, 0], sizes = [32, 32], strides = [1, 1]} : vector<32x192xbf16> to vector<32x32xbf16>
    %20 = vector.extract_strided_slice %18 {offsets = [0, 32], sizes = [32, 32], strides = [1, 1]} : vector<32x192xbf16> to vector<32x32xbf16>
    %21 = vector.extract_strided_slice %18 {offsets = [0, 64], sizes = [32, 32], strides = [1, 1]} : vector<32x192xbf16> to vector<32x32xbf16>
    %22 = vector.extract_strided_slice %18 {offsets = [0, 96], sizes = [32, 32], strides = [1, 1]} : vector<32x192xbf16> to vector<32x32xbf16>
    %23 = vector.extract_strided_slice %18 {offsets = [0, 128], sizes = [32, 32], strides = [1, 1]} : vector<32x192xbf16> to vector<32x32xbf16>
    %24 = vector.extract_strided_slice %18 {offsets = [0, 160], sizes = [32, 32], strides = [1, 1]} : vector<32x192xbf16> to vector<32x32xbf16>
    %c0_12 = arith.constant 0 : index
    %c0_13 = arith.constant 0 : index
    %25 = vector.load %arg12[%c0_12, %c0_13] : memref<32x256xbf16, #tpu.memory_space<vmem>>, vector<32x256xbf16>
    %26 = vector.extract_strided_slice %25 {offsets = [0, 0], sizes = [32, 128], strides = [1, 1]} : vector<32x256xbf16> to vector<32x128xbf16>
    %27 = vector.extract_strided_slice %25 {offsets = [0, 128], sizes = [32, 128], strides = [1, 1]} : vector<32x256xbf16> to vector<32x128xbf16>
    %c0_14 = arith.constant 0 : index
    %c0_15 = arith.constant 0 : index
    %28 = vector.load %arg15[%c0_14, %c0_15] : memref<2x128xf32, #tpu.memory_space<vmem>>, vector<2x128xf32>
    %29 = vector.extract_strided_slice %28 {offsets = [0, 0], sizes = [1, 128], strides = [1, 1]} : vector<2x128xf32> to vector<1x128xf32>
    %30 = vector.extract_strided_slice %28 {offsets = [1, 0], sizes = [1, 128], strides = [1, 1]} : vector<2x128xf32> to vector<1x128xf32>
    %c0_16 = arith.constant 0 : index
    %c0_17 = arith.constant 0 : index
    %31 = vector.load %arg7[%c0_16, %c0_17] : memref<6x32xbf16, #tpu.memory_space<vmem>>, vector<6x32xbf16>
    %32 = arith.truncf %5 : vector<1x6xf32> to vector<1x6xbf16>
    %cst = arith.constant dense<0.000000e+00> : vector<1x32xf32>
    %33 = tpu.matmul %32, %31, %cst {dimension_numbers = #tpu.dot_dimension_numbers<[1], [0], [0], [1], [0, 0, 1, 1], [], []>} : vector<1x6xbf16>, vector<6x32xbf16>, vector<1x32xf32> -> vector<1x32xf32>
    %34 = arith.addf %33, %7 : vector<1x32xf32>
    %c0_18 = arith.constant 0 : index
    %c0_19 = arith.constant 0 : index
    %35 = vector.load %arg8[%c0_18, %c0_19] : memref<4x32xbf16, #tpu.memory_space<vmem>>, vector<4x32xbf16>
    %36 = arith.truncf %3 : vector<8x4xf32> to vector<8x4xbf16>
    %cst_20 = arith.constant dense<0.000000e+00> : vector<8x32xf32>
    %37 = tpu.matmul %36, %35, %cst_20 {dimension_numbers = #tpu.dot_dimension_numbers<[1], [0], [0], [1], [0, 0, 1, 1], [], []>} : vector<8x4xbf16>, vector<4x32xbf16>, vector<8x32xf32> -> vector<8x32xf32>
    %38 = vector.broadcast %8 : vector<1x32xf32> to vector<8x32xf32>
    %39 = arith.addf %37, %38 : vector<8x32xf32>
    %c0_21 = arith.constant 0 : index
    %c0_22 = arith.constant 0 : index
    %c0_23 = arith.constant 0 : index
    %40 = vector.load %arg4[%c0_21, %c0_22, %c0_23] : memref<1x1x1xf32, #tpu.memory_space<vmem>>, vector<1x1x1xf32>
    %41 = vector.shape_cast %40 : vector<1x1x1xf32> to vector<1x1xf32>
    %c0_24 = arith.constant 0 : index
    %c0_25 = arith.constant 0 : index
    %42 = vector.load %arg5[%c0_24, %c0_25] : memref<1x16xf32, #tpu.memory_space<vmem>>, vector<1x16xf32>
    %43 = vector.broadcast %41 : vector<1x1xf32> to vector<1x16xf32>
    %44 = arith.mulf %43, %42 : vector<1x16xf32>
    %45 = math.sin %44 : vector<1x16xf32>
    %46 = math.cos %44 : vector<1x16xf32>
    %47 = tpu.concatenate %45, %46 in 1 : vector<1x16xf32>, vector<1x16xf32> -> vector<1x32xf32>
    %48 = arith.truncf %39 : vector<8x32xf32> to vector<8x32xbf16>
    %cst_26 = arith.constant dense<0.000000e+00> : vector<8x32xf32>
    %49 = tpu.matmul %48, %22, %cst_26 {dimension_numbers = #tpu.dot_dimension_numbers<[1], [0], [0], [1], [0, 0, 1, 1], [], []>} : vector<8x32xbf16>, vector<32x32xbf16>, vector<8x32xf32> -> vector<8x32xf32>
    %50 = arith.truncf %47 : vector<1x32xf32> to vector<1x32xbf16>
    %cst_27 = arith.constant dense<0.000000e+00> : vector<1x32xf32>
    %51 = tpu.matmul %50, %23, %cst_27 {dimension_numbers = #tpu.dot_dimension_numbers<[1], [0], [0], [1], [0, 0, 1, 1], [], []>} : vector<1x32xbf16>, vector<32x32xbf16>, vector<1x32xf32> -> vector<1x32xf32>
    %52 = vector.broadcast %51 : vector<1x32xf32> to vector<8x32xf32>
    %53 = arith.addf %49, %52 : vector<8x32xf32>
    %54 = vector.broadcast %9 : vector<1x32xf32> to vector<8x32xf32>
    %55 = arith.addf %53, %54 : vector<8x32xf32>
    %56 = arith.negf %55 : vector<8x32xf32>
    %57 = math.exp %56 : vector<8x32xf32>
    %cst_28 = arith.constant 1.000000e+00 : f32
    %58 = vector.broadcast %cst_28 : f32 to vector<8x32xf32>
    %59 = arith.addf %58, %57 : vector<8x32xf32>
    %60 = arith.divf %58, %59 : vector<8x32xf32>
    %61 = arith.mulf %55, %60 : vector<8x32xf32>
    %62 = arith.truncf %61 : vector<8x32xf32> to vector<8x32xbf16>
    %cst_29 = arith.constant dense<0.000000e+00> : vector<8x32xf32>
    %63 = tpu.matmul %62, %24, %cst_29 {dimension_numbers = #tpu.dot_dimension_numbers<[1], [0], [0], [1], [0, 0, 1, 1], [], []>} : vector<8x32xbf16>, vector<32x32xbf16>, vector<8x32xf32> -> vector<8x32xf32>
    %64 = vector.broadcast %10 : vector<1x32xf32> to vector<8x32xf32>
    %65 = arith.addf %63, %64 : vector<8x32xf32>
    %cst_30 = arith.constant 0.000000e+00 : f32
    %66 = vector.broadcast %cst_30 : f32 to vector<7x32xf32>
    %67 = tpu.concatenate %34, %65, %66 in 0 : vector<1x32xf32>, vector<8x32xf32>, vector<7x32xf32> -> vector<16x32xf32>
    %c0_31 = arith.constant 0 : index
    %c0_32 = arith.constant 0 : index
    %68 = vector.load %arg9[%c0_31, %c0_32] : memref<32x96xbf16, #tpu.memory_space<vmem>>, vector<32x96xbf16>
    %69 = arith.truncf %67 : vector<16x32xf32> to vector<16x32xbf16>
    %cst_33 = arith.constant dense<0.000000e+00> : vector<16x96xf32>
    %70 = tpu.matmul %69, %68, %cst_33 {dimension_numbers = #tpu.dot_dimension_numbers<[1], [0], [0], [1], [0, 0, 1, 1], [], []>} : vector<16x32xbf16>, vector<32x96xbf16>, vector<16x96xf32> -> vector<16x96xf32>
    %71 = vector.extract_strided_slice %70 {offsets = [0, 0], sizes = [16, 32], strides = [1, 1]} : vector<16x96xf32> to vector<16x32xf32>
    %72 = vector.extract_strided_slice %70 {offsets = [0, 32], sizes = [16, 32], strides = [1, 1]} : vector<16x96xf32> to vector<16x32xf32>
    %73 = vector.extract_strided_slice %70 {offsets = [0, 64], sizes = [16, 32], strides = [1, 1]} : vector<16x96xf32> to vector<16x32xf32>
    %74 = arith.truncf %71 : vector<16x32xf32> to vector<16x32xbf16>
    %75 = arith.truncf %72 : vector<16x32xf32> to vector<16x32xbf16>
    %cst_34 = arith.constant dense<0.000000e+00> : vector<16x16xf32>
    %76 = tpu.matmul %74, %75, %cst_34 {dimension_numbers = #tpu.dot_dimension_numbers<[1], [1], [0], [0], [0, 0, 1, 0], [], []>} : vector<16x32xbf16>, vector<16x32xbf16>, vector<16x16xf32> -> vector<16x16xf32>
    %c0_35 = arith.constant 0 : index
    %c0_36 = arith.constant 0 : index
    %77 = vector.load %arg6[%c0_35, %c0_36] : memref<16x16xf32, #tpu.memory_space<vmem>>, vector<16x16xf32>
    %78 = arith.addf %76, %77 : vector<16x16xf32>
    %cst_37 = arith.constant dense<0xFF800000> : vector<16xf32>
    %79 = vector.multi_reduction <maximumf>, %78, %cst_37 [1] : vector<16x16xf32> to vector<16xf32>
    %80 = vector.shape_cast %79 : vector<16xf32> to vector<16x1xf32>
    %81 = vector.broadcast %80 : vector<16x1xf32> to vector<16x16xf32>
    %82 = arith.subf %78, %81 : vector<16x16xf32>
    %83 = math.exp %82 : vector<16x16xf32>
    %cst_38 = arith.constant dense<0.000000e+00> : vector<16xf32>
    %84 = vector.multi_reduction <add>, %83, %cst_38 [1] : vector<16x16xf32> to vector<16xf32>
    %85 = vector.shape_cast %84 : vector<16xf32> to vector<16x1xf32>
    %86 = tpu.reciprocal %85 {approx = true} : vector<16x1xf32> -> vector<16x1xf32>
    %87 = vector.broadcast %86 : vector<16x1xf32> to vector<16x16xf32>
    %88 = arith.mulf %83, %87 : vector<16x16xf32>
    %89 = arith.truncf %88 : vector<16x16xf32> to vector<16x16xbf16>
    %90 = arith.truncf %73 : vector<16x32xf32> to vector<16x32xbf16>
    %cst_39 = arith.constant dense<0.000000e+00> : vector<16x32xf32>
    %91 = tpu.matmul %89, %90, %cst_39 {dimension_numbers = #tpu.dot_dimension_numbers<[1], [0], [0], [1], [0, 0, 1, 1], [], []>} : vector<16x16xbf16>, vector<16x32xbf16>, vector<16x32xf32> -> vector<16x32xf32>
    %92 = arith.truncf %91 : vector<16x32xf32> to vector<16x32xbf16>
    %cst_40 = arith.constant dense<0.000000e+00> : vector<16x32xf32>
    %93 = tpu.matmul %92, %19, %cst_40 {dimension_numbers = #tpu.dot_dimension_numbers<[1], [0], [0], [1], [0, 0, 1, 1], [], []>} : vector<16x32xbf16>, vector<32x32xbf16>, vector<16x32xf32> -> vector<16x32xf32>
    %94 = arith.addf %67, %93 : vector<16x32xf32>
    %cst_41 = arith.constant dense<0.000000e+00> : vector<16xf32>
    %95 = vector.multi_reduction <add>, %94, %cst_41 [1] : vector<16x32xf32> to vector<16xf32>
    %96 = vector.shape_cast %95 : vector<16xf32> to vector<16x1xf32>
    %cst_42 = arith.constant 3.200000e+01 : f32
    %97 = vector.broadcast %cst_42 : f32 to vector<16x1xf32>
    %98 = arith.divf %96, %97 : vector<16x1xf32>
    %99 = arith.mulf %94, %94 : vector<16x32xf32>
    %cst_43 = arith.constant dense<0.000000e+00> : vector<16xf32>
    %100 = vector.multi_reduction <add>, %99, %cst_43 [1] : vector<16x32xf32> to vector<16xf32>
    %101 = vector.shape_cast %100 : vector<16xf32> to vector<16x1xf32>
    %cst_44 = arith.constant 3.200000e+01 : f32
    %102 = vector.broadcast %cst_44 : f32 to vector<16x1xf32>
    %103 = arith.divf %101, %102 : vector<16x1xf32>
    %104 = vector.broadcast %98 : vector<16x1xf32> to vector<16x32xf32>
    %105 = arith.subf %94, %104 : vector<16x32xf32>
    %106 = arith.mulf %98, %98 : vector<16x1xf32>
    %107 = arith.subf %103, %106 : vector<16x1xf32>
    %cst_45 = arith.constant 9.99999974E-6 : f32
    %108 = vector.broadcast %cst_45 : f32 to vector<16x1xf32>
    %109 = arith.addf %107, %108 : vector<16x1xf32>
    %110 = math.rsqrt %109 : vector<16x1xf32>
    %111 = vector.broadcast %110 : vector<16x1xf32> to vector<16x32xf32>
    %112 = arith.mulf %105, %111 : vector<16x32xf32>
    %113 = vector.broadcast %12 : vector<1x32xf32> to vector<16x32xf32>
    %114 = arith.mulf %112, %113 : vector<16x32xf32>
    %115 = vector.broadcast %13 : vector<1x32xf32> to vector<16x32xf32>
    %116 = arith.addf %114, %115 : vector<16x32xf32>
    %c0_46 = arith.constant 0 : index
    %c0_47 = arith.constant 0 : index
    %117 = vector.load %arg10[%c0_46, %c0_47] : memref<32x64xbf16, #tpu.memory_space<vmem>>, vector<32x64xbf16>
    %118 = arith.truncf %1 : vector<16x32xf32> to vector<16x32xbf16>
    %cst_48 = arith.constant dense<0.000000e+00> : vector<16x64xf32>
    %119 = tpu.matmul %118, %117, %cst_48 {dimension_numbers = #tpu.dot_dimension_numbers<[1], [0], [0], [1], [0, 0, 1, 1], [], []>} : vector<16x32xbf16>, vector<32x64xbf16>, vector<16x64xf32> -> vector<16x64xf32>
    %120 = vector.extract_strided_slice %119 {offsets = [0, 0], sizes = [16, 32], strides = [1, 1]} : vector<16x64xf32> to vector<16x32xf32>
    %121 = vector.extract_strided_slice %119 {offsets = [0, 32], sizes = [16, 32], strides = [1, 1]} : vector<16x64xf32> to vector<16x32xf32>
    %122 = arith.truncf %116 : vector<16x32xf32> to vector<16x32xbf16>
    %cst_49 = arith.constant dense<0.000000e+00> : vector<16x32xf32>
    %123 = tpu.matmul %122, %20, %cst_49 {dimension_numbers = #tpu.dot_dimension_numbers<[1], [0], [0], [1], [0, 0, 1, 1], [], []>} : vector<16x32xbf16>, vector<32x32xbf16>, vector<16x32xf32> -> vector<16x32xf32>
    %124 = arith.truncf %123 : vector<16x32xf32> to vector<16x32xbf16>
    %125 = arith.truncf %120 : vector<16x32xf32> to vector<16x32xbf16>
    %cst_50 = arith.constant dense<0.000000e+00> : vector<16x16xf32>
    %126 = tpu.matmul %124, %125, %cst_50 {dimension_numbers = #tpu.dot_dimension_numbers<[1], [1], [0], [0], [0, 0, 1, 0], [], []>} : vector<16x32xbf16>, vector<16x32xbf16>, vector<16x16xf32> -> vector<16x16xf32>
    %cst_51 = arith.constant dense<0xFF800000> : vector<16xf32>
    %127 = vector.multi_reduction <maximumf>, %126, %cst_51 [1] : vector<16x16xf32> to vector<16xf32>
    %128 = vector.shape_cast %127 : vector<16xf32> to vector<16x1xf32>
    %129 = vector.broadcast %128 : vector<16x1xf32> to vector<16x16xf32>
    %130 = arith.subf %126, %129 : vector<16x16xf32>
    %131 = math.exp %130 : vector<16x16xf32>
    %cst_52 = arith.constant dense<0.000000e+00> : vector<16xf32>
    %132 = vector.multi_reduction <add>, %131, %cst_52 [1] : vector<16x16xf32> to vector<16xf32>
    %133 = vector.shape_cast %132 : vector<16xf32> to vector<16x1xf32>
    %134 = tpu.reciprocal %133 {approx = true} : vector<16x1xf32> -> vector<16x1xf32>
    %135 = vector.broadcast %134 : vector<16x1xf32> to vector<16x16xf32>
    %136 = arith.mulf %131, %135 : vector<16x16xf32>
    %137 = arith.truncf %136 : vector<16x16xf32> to vector<16x16xbf16>
    %138 = arith.truncf %121 : vector<16x32xf32> to vector<16x32xbf16>
    %cst_53 = arith.constant dense<0.000000e+00> : vector<16x32xf32>
    %139 = tpu.matmul %137, %138, %cst_53 {dimension_numbers = #tpu.dot_dimension_numbers<[1], [0], [0], [1], [0, 0, 1, 1], [], []>} : vector<16x16xbf16>, vector<16x32xbf16>, vector<16x32xf32> -> vector<16x32xf32>
    %140 = arith.truncf %139 : vector<16x32xf32> to vector<16x32xbf16>
    %cst_54 = arith.constant dense<0.000000e+00> : vector<16x32xf32>
    %141 = tpu.matmul %140, %21, %cst_54 {dimension_numbers = #tpu.dot_dimension_numbers<[1], [0], [0], [1], [0, 0, 1, 1], [], []>} : vector<16x32xbf16>, vector<32x32xbf16>, vector<16x32xf32> -> vector<16x32xf32>
    %142 = arith.addf %116, %141 : vector<16x32xf32>
    %cst_55 = arith.constant dense<0.000000e+00> : vector<16xf32>
    %143 = vector.multi_reduction <add>, %142, %cst_55 [1] : vector<16x32xf32> to vector<16xf32>
    %144 = vector.shape_cast %143 : vector<16xf32> to vector<16x1xf32>
    %cst_56 = arith.constant 3.200000e+01 : f32
    %145 = vector.broadcast %cst_56 : f32 to vector<16x1xf32>
    %146 = arith.divf %144, %145 : vector<16x1xf32>
    %147 = arith.mulf %142, %142 : vector<16x32xf32>
    %cst_57 = arith.constant dense<0.000000e+00> : vector<16xf32>
    %148 = vector.multi_reduction <add>, %147, %cst_57 [1] : vector<16x32xf32> to vector<16xf32>
    %149 = vector.shape_cast %148 : vector<16xf32> to vector<16x1xf32>
    %cst_58 = arith.constant 3.200000e+01 : f32
    %150 = vector.broadcast %cst_58 : f32 to vector<16x1xf32>
    %151 = arith.divf %149, %150 : vector<16x1xf32>
    %152 = vector.broadcast %146 : vector<16x1xf32> to vector<16x32xf32>
    %153 = arith.subf %142, %152 : vector<16x32xf32>
    %154 = arith.mulf %146, %146 : vector<16x1xf32>
    %155 = arith.subf %151, %154 : vector<16x1xf32>
    %cst_59 = arith.constant 9.99999974E-6 : f32
    %156 = vector.broadcast %cst_59 : f32 to vector<16x1xf32>
    %157 = arith.addf %155, %156 : vector<16x1xf32>
    %158 = math.rsqrt %157 : vector<16x1xf32>
    %159 = vector.broadcast %158 : vector<16x1xf32> to vector<16x32xf32>
    %160 = arith.mulf %153, %159 : vector<16x32xf32>
    %161 = vector.broadcast %14 : vector<1x32xf32> to vector<16x32xf32>
    %162 = arith.mulf %160, %161 : vector<16x32xf32>
    %163 = vector.broadcast %15 : vector<1x32xf32> to vector<16x32xf32>
    %164 = arith.addf %162, %163 : vector<16x32xf32>
    %165 = arith.truncf %164 : vector<16x32xf32> to vector<16x32xbf16>
    %cst_60 = arith.constant dense<0.000000e+00> : vector<16x128xf32>
    %166 = tpu.matmul %165, %26, %cst_60 {dimension_numbers = #tpu.dot_dimension_numbers<[1], [0], [0], [1], [0, 0, 1, 1], [], []>} : vector<16x32xbf16>, vector<32x128xbf16>, vector<16x128xf32> -> vector<16x128xf32>
    %167 = vector.broadcast %29 : vector<1x128xf32> to vector<16x128xf32>
    %168 = arith.addf %166, %167 : vector<16x128xf32>
    %169 = arith.mulf %168, %168 : vector<16x128xf32>
    %170 = arith.mulf %168, %169 : vector<16x128xf32>
    %cst_61 = arith.constant 4.471500e-02 : f32
    %171 = vector.broadcast %cst_61 : f32 to vector<16x128xf32>
    %172 = arith.mulf %171, %170 : vector<16x128xf32>
    %173 = arith.addf %168, %172 : vector<16x128xf32>
    %cst_62 = arith.constant 0.797884583 : f32
    %174 = vector.broadcast %cst_62 : f32 to vector<16x128xf32>
    %175 = arith.mulf %174, %173 : vector<16x128xf32>
    %176 = math.tanh %175 : vector<16x128xf32>
    %cst_63 = arith.constant 1.000000e+00 : f32
    %177 = vector.broadcast %cst_63 : f32 to vector<16x128xf32>
    %178 = arith.addf %177, %176 : vector<16x128xf32>
    %cst_64 = arith.constant 5.000000e-01 : f32
    %179 = vector.broadcast %cst_64 : f32 to vector<16x128xf32>
    %180 = arith.mulf %179, %178 : vector<16x128xf32>
    %181 = arith.mulf %168, %180 : vector<16x128xf32>
    %c0_65 = arith.constant 0 : index
    %c0_66 = arith.constant 0 : index
    %182 = vector.load %arg13[%c0_65, %c0_66] : memref<128x32xbf16, #tpu.memory_space<vmem>>, vector<128x32xbf16>
    %183 = arith.truncf %181 : vector<16x128xf32> to vector<16x128xbf16>
    %cst_67 = arith.constant dense<0.000000e+00> : vector<16x32xf32>
    %184 = tpu.matmul %183, %182, %cst_67 {dimension_numbers = #tpu.dot_dimension_numbers<[1], [0], [0], [1], [0, 0, 1, 1], [], []>} : vector<16x128xbf16>, vector<128x32xbf16>, vector<16x32xf32> -> vector<16x32xf32>
    %185 = arith.addf %164, %184 : vector<16x32xf32>
    %186 = vector.broadcast %11 : vector<1x32xf32> to vector<16x32xf32>
    %187 = arith.addf %185, %186 : vector<16x32xf32>
    %cst_68 = arith.constant dense<0.000000e+00> : vector<16xf32>
    %188 = vector.multi_reduction <add>, %187, %cst_68 [1] : vector<16x32xf32> to vector<16xf32>
    %189 = vector.shape_cast %188 : vector<16xf32> to vector<16x1xf32>
    %cst_69 = arith.constant 3.200000e+01 : f32
    %190 = vector.broadcast %cst_69 : f32 to vector<16x1xf32>
    %191 = arith.divf %189, %190 : vector<16x1xf32>
    %192 = arith.mulf %187, %187 : vector<16x32xf32>
    %cst_70 = arith.constant dense<0.000000e+00> : vector<16xf32>
    %193 = vector.multi_reduction <add>, %192, %cst_70 [1] : vector<16x32xf32> to vector<16xf32>
    %194 = vector.shape_cast %193 : vector<16xf32> to vector<16x1xf32>
    %cst_71 = arith.constant 3.200000e+01 : f32
    %195 = vector.broadcast %cst_71 : f32 to vector<16x1xf32>
    %196 = arith.divf %194, %195 : vector<16x1xf32>
    %197 = vector.broadcast %191 : vector<16x1xf32> to vector<16x32xf32>
    %198 = arith.subf %187, %197 : vector<16x32xf32>
    %199 = arith.mulf %191, %191 : vector<16x1xf32>
    %200 = arith.subf %196, %199 : vector<16x1xf32>
    %cst_72 = arith.constant 9.99999974E-6 : f32
    %201 = vector.broadcast %cst_72 : f32 to vector<16x1xf32>
    %202 = arith.addf %200, %201 : vector<16x1xf32>
    %203 = math.rsqrt %202 : vector<16x1xf32>
    %204 = vector.broadcast %203 : vector<16x1xf32> to vector<16x32xf32>
    %205 = arith.mulf %198, %204 : vector<16x32xf32>
    %206 = vector.broadcast %16 : vector<1x32xf32> to vector<16x32xf32>
    %207 = arith.mulf %205, %206 : vector<16x32xf32>
    %208 = vector.broadcast %17 : vector<1x32xf32> to vector<16x32xf32>
    %209 = arith.addf %207, %208 : vector<16x32xf32>
    %210 = arith.truncf %209 : vector<16x32xf32> to vector<16x32xbf16>
    %cst_73 = arith.constant dense<0.000000e+00> : vector<16x128xf32>
    %211 = tpu.matmul %210, %27, %cst_73 {dimension_numbers = #tpu.dot_dimension_numbers<[1], [0], [0], [1], [0, 0, 1, 1], [], []>} : vector<16x32xbf16>, vector<32x128xbf16>, vector<16x128xf32> -> vector<16x128xf32>
    %212 = vector.broadcast %30 : vector<1x128xf32> to vector<16x128xf32>
    %213 = arith.addf %211, %212 : vector<16x128xf32>
    %c0_74 = arith.constant 0 : index
    %c0_75 = arith.constant 0 : index
    %214 = vector.load %arg16[%c0_74, %c0_75] : memref<16x128xf32, #tpu.memory_space<vmem>>, vector<16x128xf32>
    tpu.vector_store %arg16[%c0_74, %c0_75], %213 {strides = array<i32>} : memref<16x128xf32, #tpu.memory_space<vmem>>, vector<16x128xf32>,
    return
  }
  func.func @transform_0(%arg0: i32) -> (i32, i32, i32) {
    %c0_i32 = arith.constant 0 : i32
    %c0_i32_0 = arith.constant 0 : i32
    %c0_i32_1 = arith.constant 0 : i32
    return %arg0, %c0_i32, %c0_i32_0 : i32, i32, i32
  }
  func.func @transform_1(%arg0: i32) -> (i32, i32, i32) {
    %c0_i32 = arith.constant 0 : i32
    %c0_i32_0 = arith.constant 0 : i32
    %c0_i32_1 = arith.constant 0 : i32
    return %arg0, %c0_i32, %c0_i32_0 : i32, i32, i32
  }
  func.func @transform_2(%arg0: i32) -> (i32, i32, i32) {
    %c0_i32 = arith.constant 0 : i32
    %c0_i32_0 = arith.constant 0 : i32
    %c0_i32_1 = arith.constant 0 : i32
    return %arg0, %c0_i32, %c0_i32_0 : i32, i32, i32
  }
  func.func @transform_3(%arg0: i32) -> (i32, i32, i32) {
    %c0_i32 = arith.constant 0 : i32
    %c0_i32_0 = arith.constant 0 : i32
    %c0_i32_1 = arith.constant 0 : i32
    return %arg0, %c0_i32, %c0_i32_0 : i32, i32, i32
  }
  func.func @transform_4(%arg0: i32) -> (i32, i32) {
    %c0_i32 = arith.constant 0 : i32
    %c0_i32_0 = arith.constant 0 : i32
    %c0_i32_1 = arith.constant 0 : i32
    return %c0_i32, %c0_i32_0 : i32, i32
  }
  func.func @transform_5(%arg0: i32) -> (i32, i32) {
    %c0_i32 = arith.constant 0 : i32
    %c0_i32_0 = arith.constant 0 : i32
    %c0_i32_1 = arith.constant 0 : i32
    return %c0_i32, %c0_i32_0 : i32, i32
  }
  func.func @transform_6(%arg0: i32) -> (i32, i32) {
    %c0_i32 = arith.constant 0 : i32
    %c0_i32_0 = arith.constant 0 : i32
    %c0_i32_1 = arith.constant 0 : i32
    return %c0_i32, %c0_i32_0 : i32, i32
  }
  func.func @transform_7(%arg0: i32) -> (i32, i32) {
    %c0_i32 = arith.constant 0 : i32
    %c0_i32_0 = arith.constant 0 : i32
    %c0_i32_1 = arith.constant 0 : i32
    return %c0_i32, %c0_i32_0 : i32, i32
  }
  func.func @transform_8(%arg0: i32) -> (i32, i32) {
    %c0_i32 = arith.constant 0 : i32
    %c0_i32_0 = arith.constant 0 : i32
    %c0_i32_1 = arith.constant 0 : i32
    return %c0_i32, %c0_i32_0 : i32, i32
  }
  func.func @transform_9(%arg0: i32) -> (i32, i32) {
    %c0_i32 = arith.constant 0 : i32
    %c0_i32_0 = arith.constant 0 : i32
    %c0_i32_1 = arith.constant 0 : i32
    return %c0_i32, %c0_i32_0 : i32, i32
  }
  func.func @transform_10(%arg0: i32) -> (i32, i32) {
    %c0_i32 = arith.constant 0 : i32
    %c0_i32_0 = arith.constant 0 : i32
    %c0_i32_1 = arith.constant 0 : i32
    return %c0_i32, %c0_i32_0 : i32, i32
  }
  func.func @transform_11(%arg0: i32) -> (i32, i32) {
    %c0_i32 = arith.constant 0 : i32
    %c0_i32_0 = arith.constant 0 : i32
    %c0_i32_1 = arith.constant 0 : i32
    return %c0_i32, %c0_i32_0 : i32, i32
  }
  func.func @transform_12(%arg0: i32) -> (i32, i32) {
    %c0_i32 = arith.constant 0 : i32
    %c0_i32_0 = arith.constant 0 : i32
    %c0_i32_1 = arith.constant 0 : i32
    return %c0_i32, %c0_i32_0 : i32, i32
  }
  func.func @transform_13(%arg0: i32) -> (i32, i32) {
    %c0_i32 = arith.constant 0 : i32
    %c0_i32_0 = arith.constant 0 : i32
    %c0_i32_1 = arith.constant 0 : i32
    return %c0_i32, %c0_i32_0 : i32, i32
  }
  func.func @transform_14(%arg0: i32) -> (i32, i32) {
    %c0_i32 = arith.constant 0 : i32
    %c0_i32_0 = arith.constant 0 : i32
    %c0_i32_1 = arith.constant 0 : i32
    return %c0_i32, %c0_i32_0 : i32, i32
  }
  func.func @transform_15(%arg0: i32) -> (i32, i32) {
    %c0_i32 = arith.constant 0 : i32
    %c0_i32_0 = arith.constant 0 : i32
    return %arg0, %c0_i32 : i32, i32
  }
}

</mosaic_0001>

<bundles_post_ra>
// kernel: tpu_custom_call.1
= control target key start
LH: loop header
LB: loop body
LE: loop exit
PB: predicated region body
PF: predicated region fallthrough
CT: control target
= control target key end

     0   :  { %s3543_s0 = inlined_call_operand.vmem [shape: f32[2,16,32], index: 0, kind: input, shape index: {}]   ;;  %s3544_s1 = inlined_call_operand.hbm [shape: f32[2,1,6], index: 1, kind: input, shape index: {}]   ;;  %s3545_s2 = inlined_call_operand.vmem [shape: f32[2,8,4], index: 2, kind: input, shape index: {}]   ;;  %s3546_s3 = inlined_call_operand.vmem [shape: f32[2,1,1], index: 3, kind: input, shape index: {}]   ;;  %s3547_s4 = inlined_call_operand.vmem [shape: f32[1,16], index: 4, kind: input, shape index: {}]   ;;  %s3548_s5 = inlined_call_operand.hbm [shape: f32[16,16], index: 5, kind: input, shape index: {}]   ;;  %s3549_s6 = inlined_call_operand.hbm [shape: bf16[6,32], index: 6, kind: input, shape index: {}]   ;;  %s3550_s7 = inlined_call_operand.hbm [shape: bf16[4,32], index: 7, kind: input, shape index: {}]   ;;  %s3551_s8 = inlined_call_operand.vmem [shape: bf16[32,96], index: 8, kind: input, shape index: {}]   ;;  %s3552_s9 = inlined_call_operand.hbm [shape: bf16[32,64], index: 9, kind: input, shape index: {}]   ;;  %s3553_s10 = inlined_call_operand.vmem [shape: bf16[32,192], index: 10, kind: input, shape index: {}]   ;;  %s3554_s11 = inlined_call_operand.vmem [shape: bf16[32,256], index: 11, kind: input, shape index: {}]   ;;  %s3555_s12 = inlined_call_operand.vmem [shape: bf16[128,32], index: 12, kind: input, shape index: {}]   ;;  %s3556_s13 = inlined_call_operand.vmem [shape: f32[11,32], index: 13, kind: input, shape index: {}]   ;;  %s3557_s14 = inlined_call_operand.vmem [shape: f32[2,128], index: 14, kind: input, shape index: {}]   ;;  %s3558_s15 = inlined_call_operand.hbm [shape: f32[32,128], index: 15, kind: output, shape index: {}]  }
   0x1   :  { %3567 = sst [smem:[#allocation16_spill]] %s3543_s0 }
   0x2   :  { %3568 = sst [smem:[#allocation17_spill]] %s3544_s1 }
   0x3   :  { %3569 = sst [smem:[#allocation18_spill]] %s3545_s2 }
   0x4   :  { %3570 = sst [smem:[#allocation19_spill]] %s3546_s3 }
   0x5   :  { %3571 = sst [smem:[#allocation20_spill]] %s3551_s8 }
   0x6   :  { %3572 = sst [smem:[#allocation21_spill]] %s3554_s11 }
   0x7   :  { %3573 = sst [smem:[#allocation22_spill]] %s3555_s12 }
   0x8   :  { %3574 = sst [smem:[#allocation23_spill]] %s3556_s13 }
   0x9   :  { %3575 = sst [smem:[#allocation24_spill]] %s3557_s14 }
   0xa   :  { %3576 = sst [smem:[#allocation25_spill]] %s3558_s15 }
   0xb   :  { %20 = vsyncpa [#allocation3], 0 }
   0xc   :  { %22 = vsyncpa [#allocation3 + $0x1], 0 }
   0xd   :  { %23 = vsyncpa [#allocation6], 0 }
   0xe   :  { %24 = vsyncpa [#allocation9], 0 }
   0xf   :  { %25 = vsyncpa [#allocation4], 0 }
  0x10   :  { %27 = vsyncpa [#allocation4 + $0x1], 0  ;;  %s2957_s18 = smov 0   ;;  %s2959_s19 = smov 0  }
  0x11   :  { %s2961_s20 = smov 0   ;;  %s2963_s21 = smov 0  }
  0x12 LB: > { %s2852_s22 = smov [#allocation5]   ;;  %s2978_s24 = sadd.s32 4294967295, %s2850_s21   ;;  %s2850_s21 = sphi %s2963_s21, %s3607_s21   ;;  %s2846_s20 = sphi %s2961_s20, %s3606_s20   ;;  %s2842_s19 = sphi %s2959_s19, %s3605_s19   ;;  %s2838_s18 = sphi %s2957_s18, %s3604_s18  }
  0x13   : > { %s414_s23 = sshll.u32 %s2852_s22, 4  ;;  %p2204_p0 = scmp.ge.s32.totalorder %s2850_s21, 1  ;;  %s2983_s23 = int_to_ptr.vmem [resolvable:$true] %s414_s23 }
  0x14   : > { %p3564_p1 = scmp.eq.s32.totalorder %s2978_s24, 0  ;;  %p399_p2 = scmp.lt.s32.totalorder %s2850_s21, 3 }
  0x15   : > { %s2853_s26 = smov [#allocation8]   ;;  %s2854_s29 = smov [#allocation7]  }
  0x16   : > { %p2985_p3 = pnand %p2204_p0, %p399_p2  ;;  %s439_s27 = sshll.u32 %s2853_s26, 4  ;;  %s2998_s27 = int_to_ptr.vmem [resolvable:$true] %s439_s27 }
  0x17   : > { %s428_s30 = sshll.u32 %s2854_s29, 4  ;;  %s2634_s22 = scalar_lea.hbm %s3548_s5, 256  ;;  %s3000_s30 = int_to_ptr.vmem [resolvable:$true] %s428_s30 }
  0x18   : > { %s3577_s25 = scalar_select %p2985_p3, 1, 0 }
  0x19   : > { %p2483_p5 = pneg %p2985_p3  ;;  %p2635_p7 = scmp.ne.s32.totalorder %s3548_s5, %s2634_s22 }
  0x1a   : > { %p2641_p11 = scmp.lt.u32.totalorder %s2634_s22, %s3548_s5 }
  0x1b   : > { %p2994_p6 = pnand %p2483_p5, %p3564_p1 }
  0x1d   : > { %p3010_p8 = pneg %p2994_p6 }
  0x1f   : > { %p2637_p9 = pnand %p3010_p8, %p2635_p7 }
  0x21   : > { %p2638_p10 = pneg %p2637_p9 }
  0x23   : > { %p2643_p12 = pnand %p2641_p11, %p2638_p10 }
  0x25   : > { %2646 = shalt.err (!%p2643_p12)
}
  0x26   : > { %s2647_s14 = scalar_lea.vmem %s2983_s23, 256  ;;  %p2655_p5 = scmp.lt.s32.totalorder %s2983_s23, %s2983_s23 }
  0x27   : > { %p2648_p13 = scmp.ne.s32.totalorder %s2983_s23, %s2647_s14  ;;  %p2656_p4 = scmp.lt.s32.totalorder %s2647_s14, %s2647_s14 }
  0x29   : > { %p2650_p0 = pnand %p2648_p13, %p3010_p8  ;;  %p2657_p7 = por %p2656_p4, %p2655_p5 }
  0x2b   : > { %p2651_p2 = pneg %p2650_p0 }
  0x2d   : > { %p2658_p9 = pnand %p2657_p7, %p2651_p2 }
  0x2f   : > { %2661 = shalt.err (!%p2658_p9)
}
  0x30   : > { %s2855_s15 = smov 128   ;;  %s2856_s12 = smov 8  }
  0x31   : > { %2486 = dma.hbm_to_vmem [thread:$0]  (!%p2994_p6), %s3548_s5, 256, %s2983_s23, [#allocation6], %s2855_s15, %s2855_s15, %s2856_s12  }
  0x32   : > { %s2662_s11 = scalar_lea.hbm %s3550_s7, 32 }
  0x33   : > { %p2663_p4 = scmp.ne.s32.totalorder %s3550_s7, %s2662_s11  ;;  %p2669_p12 = scmp.lt.u32.totalorder %s2662_s11, %s3550_s7 }
  0x35   : > { %p2665_p10 = pnand %p2663_p4, %p3010_p8 }
  0x37   : > { %p2666_p11 = pneg %p2665_p10 }
  0x39   : > { %p2671_p13 = pnand %p2669_p12, %p2666_p11 }
  0x3b   : > { %2674 = shalt.err (!%p2671_p13)
}
  0x3c   : > { %s2675_s23 = scalar_lea.vmem %s2998_s27, 32  ;;  %p2683_p7 = scmp.lt.s32.totalorder %s2998_s27, %s2998_s27 }
  0x3d   : > { %p2676_p0 = scmp.ne.s32.totalorder %s2998_s27, %s2675_s23  ;;  %p2684_p9 = scmp.lt.s32.totalorder %s2675_s23, %s2675_s23 }
  0x3f   : > { %p2678_p2 = pnand %p2676_p0, %p3010_p8  ;;  %p2685_p4 = por %p2684_p9, %p2683_p7 }
  0x41   : > { %p2679_p5 = pneg %p2678_p2 }
  0x43   : > { %p2686_p10 = pnand %p2685_p4, %p2679_p5 }
  0x45   : > { %2689 = shalt.err (!%p2686_p10)
}
  0x46   : > { %2492 = dma.hbm_to_vmem [thread:$0]  (!%p2994_p6), %s3550_s7, 32, %s2998_s27, [#allocation9]  }
  0x47   : > { %s2690_s15 = scalar_lea.hbm %s3549_s6, 64 }
  0x48   : > { %p2691_p11 = scmp.ne.s32.totalorder %s3549_s6, %s2690_s15  ;;  %p2697_p0 = scmp.lt.u32.totalorder %s2690_s15, %s3549_s6 }
  0x4a   : > { %p2693_p12 = pnand %p2691_p11, %p3010_p8 }
  0x4c   : > { %p2694_p13 = pneg %p2693_p12 }
  0x4e   : > { %p2699_p2 = pnand %p2697_p0, %p2694_p13 }
  0x50   : > { %2702 = shalt.err (!%p2699_p2)
}
  0x51   : > { %s2703_s27 = scalar_lea.vmem %s3000_s30, 64  ;;  %p2711_p4 = scmp.lt.s32.totalorder %s3000_s30, %s3000_s30 }
  0x52   : > { %p2704_p5 = scmp.ne.s32.totalorder %s3000_s30, %s2703_s27  ;;  %p2712_p10 = scmp.lt.s32.totalorder %s2703_s27, %s2703_s27 }
  0x54   : > { %p2706_p7 = pnand %p2704_p5, %p3010_p8  ;;  %p2713_p11 = por %p2712_p10, %p2711_p4 }
  0x56   : > { %p2707_p9 = pneg %p2706_p7 }
  0x58   : > { %p2714_p12 = pnand %p2713_p11, %p2707_p9 }
  0x5a   : > { %2717 = shalt.err (!%p2714_p12)
}
  0x5b   : > { %2489 = dma.hbm_to_vmem [thread:$0]  (!%p2994_p6), %s3549_s6, 64, %s3000_s30, [#allocation6]  }
  0x5c   : > { %s2857_s23 = smov [#allocation10]   ;;  %s2718_s13 = scalar_lea.hbm %s3552_s9, 256 }
  0x5d   : > { %s452_s0 = sshll.u32 %s2857_s23, 4  ;;  %p2719_p13 = scmp.ne.s32.totalorder %s3552_s9, %s2718_s13  ;;  %s453_s0 = int_to_ptr.vmem [resolvable:$true] %s452_s0 }
  0x5e   : > { %p2725_p5 = scmp.lt.u32.totalorder %s2718_s13, %s3552_s9 }
  0x5f   : > { %p2721_p0 = pnand %p2719_p13, %p3010_p8 }
  0x61   : > { %p2722_p2 = pneg %p2721_p0 }
  0x63   : > { %p2727_p7 = pnand %p2725_p5, %p2722_p2 }
  0x65   : > { %2730 = shalt.err (!%p2727_p7)
}
  0x66   : > { %s2731_s30 = scalar_lea.vmem %s453_s0, 256  ;;  %p2739_p11 = scmp.lt.s32.totalorder %s453_s0, %s453_s0 }
  0x67   : > { %p2732_p9 = scmp.ne.s32.totalorder %s453_s0, %s2731_s30  ;;  %p2740_p12 = scmp.lt.s32.totalorder %s2731_s30, %s2731_s30 }
  0x69   : > { %p2734_p4 = pnand %p2732_p9, %p3010_p8  ;;  %p2741_p1 = por %p2740_p12, %p2739_p11 }
  0x6b   : > { %p2735_p10 = pneg %p2734_p4 }
  0x6d   : > { %p2742_p3 = pnand %p2741_p1, %p2735_p10 }
  0x6f   : > { %2745 = shalt.err (!%p2742_p3)
}
  0x70   : > { %s2858_s22 = smov 64   ;;  %s2859_s26 = smov 4  }
  0x71   : > { %2495 = dma.hbm_to_vmem [thread:$0]  (!%p2994_p6), %s3552_s9, 256, %s453_s0, [#allocation9], %s2858_s22, %s2858_s22, %s2859_s26  }
  0x72   : > { %s2203_s14 = sadd.s32 4294967294, %s2850_s21   ;;  %s3097_s23 = sadd.s32 1, %s2850_s21  }
  0x73   : > { %s63_s8 = ssub.s32 %s2850_s21, %s3097_s23  ;;  %s66_s11 = sadd.s32 1, %s2846_s20 }
  0x74   : > { %p64_p1 = scmp.eq.s32.totalorder %s63_s8, 0  ;;  %p73_p3 = scmp.ne.s32.totalorder %s2846_s20, %s2842_s19 }
  0x75   : > { %p74_p8 = scmp.eq.s32.totalorder %s2850_s21, 0  ;;  %p79_p13 = scmp.ne.s32.totalorder %s2842_s19, %s2838_s18 }
  0x76   : > { %s3108_s13 = scalar_select %p64_p1, %s2846_s20, %s66_s11  }
  0x77   : > { %p3110_p0 = por %p74_p8, %p73_p3  ;;  %p3581_p2 = scmp.eq.s32.totalorder %s2978_s24, 0 }
  0x78   : > { %p386_p5 = scmp.eq.s32.totalorder %s2978_s24, 1  ;;  %p392_p7 = scmp.eq.s32.totalorder %s2203_s14, 1 }
  0x79   : > { %p3116_p6 = por %p3581_p2, %p79_p13  ;;  %p2508_p9 = scmp.lt.s32.totalorder %s2850_s21, 2 }
  0x7a   : > { %s489_s15 = sand.u32 1, %s2846_s20   ;;  %p3123_p4 = por %p386_p5, %p73_p3 }
  0x7b   : > { %p3127_p10 = por %p392_p7, %p79_p13  ;;  %s2210_s17 = sshll.u32 %s2850_s21, 4 }
  0x7c   : > { %s3583_s12 = scalar_select %p3123_p4, 1, 0 }
  0x7d   : > { %s3584_s16 = scalar_select %p3127_p10, 1, 0 }
  0x7e   : > { %s492_s30 = scalar_lea.vmem [#allocation2], %s489_s15  ;;  %s3585_s1 = sld [smem:[#allocation17_spill]] }
  0x7f   : > { %s499_s22 = sshll.u32 %s492_s30, 4  ;;  %p3141_p11 = pnand %p2508_p9, %p3110_p0  ;;  %s3137_s22 = int_to_ptr.vmem [resolvable:$true] %s499_s22 }
  0x80   : > { %s490_s8 = scalar_lea.sflag [#allocation3], %s489_s15 }
  0x81   : > { %p2748_p1 = pneg %p3141_p11 }
  0x84   : > { %s3135_s29 = scalar_lea.hbm %s3585_s1, %s2210_s17  ;;  %s2751_s26 = scalar_lea.hbm %s3585_s1, 32 }
  0x85   : > { %s2746_s11 = scalar_lea.hbm %s3135_s29, 16  ;;  %p2752_p13 = scmp.lt.u32.totalorder %s3135_s29, %s3585_s1 }
  0x86   : > { %p2747_p12 = scmp.ne.s32.totalorder %s3135_s29, %s2746_s11  ;;  %p2753_p0 = scmp.lt.u32.totalorder %s2751_s26, %s2746_s11 }
  0x87   : > { %p2755_p5 = scmp.lt.u32.totalorder %s2746_s11, %s3135_s29 }
  0x88   : > { %p2749_p3 = pnand %p2748_p1, %p2747_p12  ;;  %p2754_p2 = por %p2753_p0, %p2752_p13 }
  0x8a   : > { %p2750_p8 = pneg %p2749_p3  ;;  %p2756_p7 = por %p2755_p5, %p2754_p2 }
  0x8c   : > { %p2757_p9 = pnand %p2756_p7, %p2750_p8 }
  0x8e   : > { %2760 = shalt.err (!%p2757_p9)
}
  0x8f   : > { %s2761_s15 = scalar_lea.vmem %s3137_s22, 16  ;;  %s2860_s17 = smov [#allocation2]  }
  0x90   : > { %p2762_p12 = scmp.ne.s32.totalorder %s3137_s22, %s2761_s15  ;;  %s2766_s30 = sshll.u32 %s2860_s17, 4  ;;  %s2767_s30 = int_to_ptr.vmem [resolvable:$false] %s2766_s30 }
  0x91   : > { %s2768_s28 = scalar_lea.vmem %s2767_s30, 32  ;;  %p2769_p4 = scmp.lt.s32.totalorder %s3137_s22, %s2767_s30 }
  0x92   : > { %p2764_p3 = pnand %p2762_p12, %p2748_p1  ;;  %p2770_p13 = scmp.lt.s32.totalorder %s2768_s28, %s2761_s15 }
  0x94   : > { %p2765_p10 = pneg %p2764_p3  ;;  %p2771_p0 = por %p2770_p13, %p2769_p4 }
  0x96   : > { %p2772_p2 = pnand %p2771_p0, %p2765_p10 }
  0x98   : > { %2775 = shalt.err (!%p2772_p2)
}
  0x99   : > { %2499 = dma.hbm_to_vmem [thread:$0]  (!%p3141_p11), %s3135_s29, 16, %s3137_s22, %s490_s8  }
  0x9a   : > { %p3587_p8 = scmp.ne.s32.totalorder %s3577_s25, 0 }
  0x9b   : > { %s3173_s11 = sand.u32 (!%p3587_p8), 1, %s2842_s19  }
  0x9c   : > { %521 = sbr.rel (%p3587_p8) target bundleno = 4681 (0x1249), region = 80  ;;  %s524_s26 = scalar_lea.sflag (!%p3587_p8), [#allocation3], %s3173_s11 }
  0x9d   : > { %s526_s27 = scalar_lea.vmem (!%p3587_p8), [#allocation2], %s3173_s11 }
  0xa3   : > { %2821 = dma.done.wait (%p3116_p6), %s524_s26, 16  }
  0xa4   : > { %2823 = vsyncadd (%p3116_p6), %s524_s26, 4294967280  ;;  %p3588_p4 = scmp.eq.s32.totalorder %s2978_s24, 0 }
  0xa6   : > { %2825 = dma.done.wait (%p3588_p4), [#allocation6], 320   ;;  %p3589_p10 = pmov %p3588_p4 }
  0xa7   : > { %p3590_p11 = pmov %p3588_p4 }
  0xa8   : > { %2827 = vsyncadd (%p3589_p10), [#allocation6], 4294966976 }
  0xa9   : > { %2829 = dma.done.wait (%p3590_p11), [#allocation9], 288   ;;  %p3591_p1 = pmov %p3588_p4 }
  0xaa   : > { %p600_p5 = scmp.lt.s32.totalorder %s2978_s24, 1  ;;  %v2861_v0 = vmov 0   ;;  %v2862_v1 = vmov 0.0   ;;  %vm2863_vm0 = vmmov 0   ;;  %s3592_s3 = sld [smem:[#allocation19_spill]]  ;;  %vm689_vm1 = vcmask 1041408  }
  0xab   : > { %2831 = vsyncadd (%p3591_p1), [#allocation9], 4294967008  ;;  %2569 = vset.pattern.permute.xlu0 %v2861_v0  ;;  %2329 = vmatprep.subr.bf16.mxu1 %v2862_v1  ;;  %s3593_s2 = sld [smem:[#allocation18_spill]]  ;;  %v679_v3 = vld [vmem:[#allocation8] sm:$0x3]  ;;  %vm685_vm2 = vcmask 31744   ;;  %v681_v14 = vlaneseq }
  0xac   : > { %s3192_s25 = scalar_select %p600_p5, %s2978_s24, 1  ;;  %2331 = vmatprep.mubr.msk.bf16.mxu1 %vm2863_vm0, %v2862_v1  ;;  %2323 = vmatprep.subr.bf16.mxu0 %v2862_v1  ;;  %v691_v5 = vsel %vm689_vm1, %v679_v3, 0  ;;  %v3213_v7 = vld [vmem:[%s3553_s10] ss:$8 sps:$4 sm:$0xff]   ;;  %vm635_vm3 = vcmask 1042432   ;;  %vm631_vm4 = vcmask 48128  }
  0xad   : > { %2325 = vmatprep.mubr.msk.bf16.mxu0 %vm2863_vm0, %v2862_v1  ;;  %2330 = vmatpush3.bf16.msra.mxu1 %v691_v5  ;;  %v629_v8 = vld [vmem:[#allocation7] sm:$0x7]  ;;  %v617_v9 = vld [vmem:[%s526_s27] sm:$0x1]  ;;  %s2864_s26 = smov 32   ;;  %v3234_v15 = vshrl.u32 %v681_v14, 7 }
  0xae   : > { %s2219_s14 = sshll.u32 %s3192_s25, 3  ;;  %2359 = vmatprep.subr.bf16.mxu1 %v2862_v1  ;;  %1030 = vrot.lane.b32.xlu1 %v3213_v7, %s2864_s26  ;;  %v3221_v10 = vld [vmem:[%s3553_s10 + $0x10] ss:$8 sps:$4 sm:$0xff]   ;;  %v637_v11 = vsel %vm635_vm3, %v629_v8, 0  ;;  %v630_v12 = vpack.c.bf16 %v617_v9, %v617_v9  ;;  %v3226_v13 = vld [vmem:[%s3553_s10 + $0x4] ss:$8 sps:$4 sm:$0xff]  }
  0xaf   : > { %2324 = vmatpush3.bf16.msra.mxu0 %v637_v11  ;;  %v3237_v16 = vsub.s32 0, %v3234_v15  ;;  %v734_v17 = vld [vmem:[%s3547_s4] sm:$0x1]  ;;  %v2865_v31 = vmov 683565275   ;;  %s2871_s30 = smov 96  }
  0xb0   : > { %s611_s29 = scalar_lea.vmem %s3592_s3, %s3192_s25  ;;  %2335 = vmatprep.subr.bf16.mxu0 %v2862_v1  ;;  %v2866_v33 = vmov 2475754826   ;;  %v2867_v36 = vmov 2131351028   ;;  %v2868_v39 = vmov 2102212464  }
  0xb1   : > { %s608_s17 = scalar_lea.vmem %s3593_s2, %s2219_s14  ;;  %v733_v2 = vld [vmem:[%s611_s29] sm:$0x1]  ;;  %v2869_v42 = vmov 920167782   ;;  %v2870_v45 = vmov 1326507024  }
  0xb2   : > { %737 = vperm.xlu0 %2569, %v733_v2   ;;  %v616_v4 = vld [vmem:[%s608_s17] sm:$0xff]  ;;  %1032 = vrot.lane.b32.xlu1 %v3221_v10, %s2864_s26  ;;  %s2872_s28 = smov 16   ;;  %s3594_s22 = sld [smem:[#allocation23_spill]] }
  0xb3   : > { %v680_v6 = vpack.c.bf16 %v616_v4, %v616_v4  ;;  %2326 = vmatmul.mubr.msk.bf16.vlgmr.msra.gmra.mrb[0].mxu0 %vm631_vm4, %v630_v12  ;;  %s3595_s15 = sld [smem:[#allocation20_spill]]  ;;  %s2873_s26 = smov 64  }
  0xb4   : > { %2336 = vmatpush3.bf16.msra.mxu0 %v3226_v13  ;;  %2339 = vmatprep.mubr.msk.bf16.mxu0 %vm2863_vm0, %v2862_v1  ;;  %s2270_s0 = sshll.u32 %s3192_s25, 4  ;;  %s3596_s27 = sld [smem:[#allocation16_spill]] }
  0xb5   : > { %2332 = vmatmul.mubr.msk.bf16.vlgmr.msra.gmra.mrb[0].mxu1 %vm685_vm2, %v680_v6  ;;  %2337 = vmatprep.subr.bf16.mxu0 %v2862_v1  ;;  %s3597_s17 = sld [smem:[#allocation21_spill]]  ;;  %s3598_s14 = sld [smem:[#allocation22_spill]] }
  0xb6   : > { %2363 = vmatprep.mubr.msk.bf16.mxu1 %vm2863_vm0, %v2862_v1  ;;  %s3599_s1 = sld [smem:[#allocation24_spill]]  ;;  %s2049_s25 = scalar_lea.sflag [#allocation4], %s3173_s11 }
  0xb7   : > { %p3601_p7 = scmp.ne.s32.totalorder %s3583_s12, 0 }
  0xba   : > { %s604_s8 = scalar_lea.vmem %s3596_s27, %s2270_s0  ;;  %s2271_s0 = sshll.u32 %s2978_s24, 8 }
  0xbb   : > { %s3600_s27 = sld [smem:[#allocation25_spill]] }
 0x131   : > { %v738_v18 = vpop.permute.xlu0 %737 }
 0x132   : > { %v743_v19 = vrot.slane %v738_v18, %v3237_v16 }
 0x134   : > { %v3243_v20 = vmul.f32 %v743_v19, %v734_v17 }
 0x136   : > { %v748_v21 = vand.u32 2139095040, %v3243_v20  ;;  %v745_v25 = vand.u32 2147483647, %v3243_v20  ;;  %vm747_vm12 = vcmp.lt.s32.totalorder %v3243_v20, 0 }
 0x138   : > { %v749_v22 = vshrl.u32 %v748_v21, 23  ;;  %v752_v28 = vand.u32 8388607, %v745_v25  ;;  %vm746_vm13 = vcmp.le.f32.partialorder %v745_v25, 0.7853982 }
 0x13a   : > { %v2222_v23 = vadd.s32 4294967169, %v749_v22  ;;  %v753_v47 = vor.u32 8388608, %v752_v28 }
 0x13c   : > { %v755_v24 = vadd.s32 1, %v2222_v23  ;;  %v793_v61 = vshll.u32 %v753_v47, 8  ;;  %v2575_v47 = vld [vmem:[%s3553_s10 + $0x14] ss:$8 sps:$4 sm:$0xff]  }
 0x13d   : > { %2338 = vmatpush3.bf16.msra.mxu0 %v2575_v47  ;;  %1098 = vrot.lane.b32.xlu1 %v2575_v47, %s2871_s30  ;;  %v1094_v47 = vsub.s32 3, %v3234_v15 }
 0x13e   : > { %vm756_vm5 = vcmp.gt.s32.totalorder %v755_v24, 0  ;;  %2343 = vmatprep.subr.bf16.mxu0 %v2862_v1 }
 0x13f   : > { %v757_v26 = vsel %vm756_vm5, %v755_v24, 0  ;;  %vm837_vm5 = vweird.f32 %v3243_v20 }
 0x140   : > { %v759_v27 = vand.u32 31, %v757_v26  ;;  %v758_v30 = vshrl.u32 %v757_v26, 5 }
 0x142   : > { %v760_v29 = vsub.s32 32, %v759_v27  ;;  %v762_v32 = vshll.u32 %v2865_v31, %v759_v27  ;;  %v765_v34 = vshll.u32 %v2866_v33, %v759_v27  ;;  %v768_v38 = vshll.u32 %v2867_v36, %v759_v27 }
 0x143   : > { %v771_v41 = vshll.u32 %v2868_v39, %v759_v27  ;;  %v774_v44 = vshll.u32 %v2869_v42, %v759_v27  ;;  %vm777_vm6 = vcmp.lt.s32.totalorder %v758_v30, 1  ;;  %vm780_vm7 = vcmp.lt.s32.totalorder %v758_v30, 4 }
 0x144   : > { %v763_v35 = vshrl.u32 %v2866_v33, %v760_v29  ;;  %v766_v37 = vshrl.u32 %v2867_v36, %v760_v29  ;;  %v769_v40 = vshrl.u32 %v2868_v39, %v760_v29  ;;  %v772_v43 = vshrl.u32 %v2869_v42, %v760_v29 }
 0x145   : > { %v775_v46 = vshrl.u32 %v2870_v45, %v760_v29  ;;  %v761_v56 = vshrl.u32 %v2865_v31, %v760_v29  ;;  %vm779_vm8 = vcmp.lt.s32.totalorder %v758_v30, 3  ;;  %vm778_vm9 = vcmp.lt.s32.totalorder %v758_v30, 2 }
 0x146   : > { %v764_v48 = vor.u32 %v763_v35, %v762_v32  ;;  %v767_v49 = vor.u32 %v766_v37, %v765_v34  ;;  %v770_v50 = vor.u32 %v769_v40, %v768_v38  ;;  %v773_v51 = vor.u32 %v772_v43, %v771_v41 }
 0x147   : > { %v776_v52 = vor.u32 %v775_v46, %v774_v44 }
 0x148   : > { %v782_v53 = vsel %vm780_vm7, %v770_v50, 2102212464  ;;  %v785_v54 = vsel %vm777_vm6, %v764_v48, %v767_v49  ;;  %v789_v55 = vsel %vm777_vm6, %v767_v49, %v770_v50  ;;  %v786_v57 = vsel %vm780_vm7, %v773_v51, 920167782 }
 0x149   : > { %v790_v58 = vsel %vm780_vm7, %v776_v52, 1326507024  ;;  %v787_v59 = vsel %vm779_vm8, %v770_v50, %v786_v57  ;;  %v781_v62 = vsel %vm777_vm6, %v761_v56, %v764_v48  ;;  %v783_v63 = vsel %vm779_vm8, %v767_v49, %v782_v53 }
 0x14a   : > { %v791_v60 = vsel %vm779_vm8, %v773_v51, %v790_v58  ;;  %v788_v0 = vsel %vm778_vm9, %v785_v54, %v787_v59  ;;  %v784_v8 = vsel %vm778_vm9, %v781_v62, %v783_v63  ;;  %vm960_vm6 = vcmask 130048  }
 0x14b   : > { %v792_v2 = vsel %vm778_vm9, %v789_v55, %v791_v60  ;;  %v3252_v5 = vmul.u32.u64.low %v793_v61, %v788_v0  ;;  %v3253_v6 = vmul.u32.u64.high %v793_v61, %v788_v0, %v3252_v5  ;;  %v800_v11 = vmul.u32 %v793_v61, %v784_v8  ;;  %v3280_v8 = vld [vmem:[%s3594_s22] sm:$0xff] }
 0x14c   : > { %v3249_v3 = vmul.u32.u64.low %v793_v61, %v792_v2  ;;  %v3250_v4 = vmul.u32.u64.high %v793_v61, %v792_v2, %v3249_v3  ;;  %vm976_vm7 = vcmask 261120   ;;  %vm1148_vm8 = vcmask 1040384  }
 0x14d   : > { %v803_v9 = vadd.s32 1, %v3253_v6 }
 0x14e   : > { %vm802_vm10 = vc.u32 %v3250_v4, %v3252_v5  ;;  %v801_v28 = vadd.s32 %v3252_v5, %v3250_v4 }
 0x14f   : > { %v804_v12 = vsel %vm802_vm10, %v803_v9, %v3253_v6  ;;  %v3275_v6 = vsub.s32 1, %v3234_v15 }
 0x150   : > { %v805_v14 = vadd.s32 %v804_v12, %v800_v11  ;;  %v1031_v11 = vpop.permute.xlu1 %1030 }
 0x151   : > { %v684_v12 = vrot.slane %v3280_v8, %v3275_v6 }
 0x152   : > { %v806_v17 = vadd.s32 536870912, %v805_v14 }
 0x154   : > { %v807_v18 = vshrl.u32 %v806_v17, 30 }
 0x156   : > { %v808_v19 = vshll.u32 %v807_v18, 30  ;;  %v831_v40 = vsub.s32 4, %v807_v18 }
 0x158   : > { %v809_v21 = vsub.s32 %v805_v14, %v808_v19  ;;  %v832_v43 = vsel %vm747_vm12, %v831_v40, %v807_v18  ;;  %v1033_v18 = vpop.permute.xlu1 %1032 }
 0x159   : > { %v834_v45 = vsel %vm746_vm13, 0, %v832_v43 }
 0x15a   : > { %v811_v22 = vsub.s32 0, %v809_v21  ;;  %v838_v46 = vadd.s32 3, %v834_v45  ;;  %v942_v48 = vand.u32 3, %v834_v45  ;;  %v2576_v45 = vld [vmem:[%s3595_s15] sm:$0xff]  }
 0x15b   : > { %2360 = vmatpush3.bf16.msra.mxu1 %v2576_v45 }
 0x15c   : > { %v2223_v23 = vmin.u32 %v811_v22, %v809_v21  ;;  %v839_v49 = vand.u32 3, %v838_v46  ;;  %vm947_vm14 = vcmp.eq.s32.totalorder %v942_v48, 2  ;;  %vm944_vm1 = vcmp.eq.s32.totalorder %v942_v48, 0  ;;  %2361 = vmatprep.subr.bf16.mxu1 %v2862_v1  ;;  %v2577_v46 = vld [vmem:[%s3595_s15 + $0x8] sm:$0xff]  }
 0x15d   : > { %vm943_vm3 = vcmp.lt.s32.totalorder %v942_v48, 2  ;;  %v1081_v22 = vsub.s32 2, %v3234_v15  ;;  %v1095_v48 = vrot.slane %v3280_v8, %v1094_v47 }
 0x15e   : > { %v813_v24 = vclz %v2223_v23  ;;  %vm844_vm15 = vcmp.eq.s32.totalorder %v839_v49, 2  ;;  %vm841_vm2 = vcmp.eq.s32.totalorder %v839_v49, 0  ;;  %vm840_vm4 = vcmp.lt.s32.totalorder %v839_v49, 2  ;;  %v3298_v23 = vld [vmem:[%s3594_s22 + $0x8] sm:$0x7] }
 0x15f   : > { %2362 = vmatpush3.bf16.msra.mxu1 %v2577_v46 }
 0x160   : > { %v2224_v26 = vadd.s32 4294967294, %v813_v24  ;;  %2373 = vmatprep.subr.bf16.mxu1 %v2862_v1 }
 0x162   : > { %vm2225_vm11 = vcmp.lt.s32.totalorder %v2224_v26, 0 }
 0x163   : > { %v816_v27 = vsel %vm2225_vm11, 0, %v2224_v26  ;;  %v3301_v26 = vrot.slane %v3298_v23, %v1081_v22 }
 0x164   : > { %v817_v29 = vsub.s32 32, %v816_v27  ;;  %v821_v30 = vsub.s32 4294967266, %v816_v27  ;;  %v818_v31 = vshll.u32 %v809_v21, %v816_v27 }
 0x166   : > { %v819_v32 = vshrl.u32 %v801_v28, %v817_v29  ;;  %v822_v33 = vadd.s32 127, %v821_v30 }
 0x168   : > { %v820_v34 = vor.u32 %v819_v32, %v818_v31  ;;  %v823_v35 = vshll.u32 %v822_v33, 23  ;;  %v1082_v32 = vrot.slane %v3280_v8, %v1081_v22 }
 0x16a   : > { %v824_v36 = vor.u32 4788187, %v823_v35  ;;  %v827_v38 = vcvt.s32.f32 %v820_v34 }
 0x16c   : > { %v825_v37 = vand.u32 2147483647, %v824_v36 }
 0x16e   : > { %v828_v39 = vmul.f32 %v827_v38, %v825_v37 }
 0x170   : > { %v829_v41 = vxor.u32 2147483648, %v828_v39 }
 0x172   : > { %v830_v42 = vsel %vm747_vm12, %v829_v41, %v828_v39 }
 0x173   : > { %v833_v44 = vsel %vm746_vm13, %v3243_v20, %v830_v42 }
 0x174   : > { %2594 = vcosq.f32 %v833_v44 }
 0x175   : > { %2596 = vsinq.f32 %v833_v44 }
 0x17e   : > { %v2595_v50 = vpop.eup %2594 }
 0x17f   : > { %v2597_v51 = vpop.eup %2596  ;;  %v845_v52 = vxor.u32 2147483648, %v2595_v50 }
 0x180   : > { %v842_v25 = vxor.u32 2147483648, %v2597_v51 }
 0x181   : > { %v949_v53 = vsel %vm947_vm14, %v845_v52, %v2597_v51  ;;  %v846_v54 = vsel %vm844_vm15, %v845_v52, %v2597_v51 }
 0x182   : > { %v946_v55 = vsel %vm944_vm1, %v2595_v50, %v842_v25  ;;  %v843_v56 = vsel %vm841_vm2, %v2595_v50, %v842_v25 }
 0x183   : > { %v950_v57 = vsel %vm943_vm3, %v946_v55, %v949_v53  ;;  %v847_v58 = vsel %vm840_vm4, %v843_v56, %v846_v54 }
 0x184   : > { %v951_v59 = vsel %vm837_vm5, nan, %v950_v57  ;;  %v848_v60 = vsel %vm837_vm5, nan, %v847_v58 }
 0x185   : > { %v956_v61 = vrot.slane %v951_v59, %v3237_v16 }
 0x186   : > { %v3272_v3 = vpop.f32.mrb[0].mxu0 }
 0x187   : > { %957 = vrot.lane.b32.xlu0 %v956_v61, %s2872_s28  ;;  %v2327_v20 = vpop.f32.mrb[1].mxu0  ;;  %v674_v25 = vadd.f32 %v3272_v3, %v3280_v8 }
 0x188   : > { %v727_v62 = vpop.f32.mrb[0].mxu1  ;;  %v676_v4 = vpop.f32.mrb[2].mxu0  ;;  %v1214_v20 = vld [vmem:[#allocation5 + $0x8] sm:$0xff] }
 0x189   : > { %v2333_v63 = vpop.f32.mrb[1].mxu1  ;;  %v2328_v5 = vpop.f32.mrb[3].mxu0  ;;  %v728_v17 = vadd.f32 %v727_v62, %v684_v12 }
 0x18a   : > { %v730_v0 = vpop.f32.mrb[2].mxu1 }
 0x18b   : > { %v2334_v2 = vpop.f32.mrb[3].mxu1  ;;  %1096 = vrot.lane.b32.xlu0 %v3226_v13, %s2871_s30  ;;  %v962_v19 = vpack.c.bf16 %v728_v17, %v728_v17 }
 0x18c   : > { %v1213_v2 = vld [vmem:[#allocation5] sm:$0xff] }
 0x1af   : > { %v1099_v24 = vpop.permute.xlu1 %1098 }
 0x1f9   : > { %v958_v9 = vpop.permute.xlu0 %957 }
 0x1fa   : > { %v961_v13 = vsel %vm960_vm6, %v848_v60, %v958_v9 }
 0x1fb   : > { %v963_v14 = vpack.c.bf16 %v961_v13, %v961_v13 }
 0x1fd   : > { %2340 = vmatmul.mubr.msk.bf16.vlgmr.msra.gmra.mrb[4].mxu0 %vm976_vm7, %v963_v14  ;;  %v1097_v21 = vpop.permute.xlu0 %1096 }
 0x1fe   : > { %2344 = vmatpush3.bf16.msra.mxu0 %v1031_v11  ;;  %2347 = vmatprep.mubr.msk.bf16.mxu0 %vm2863_vm0, %v2862_v1 }
 0x1ff   : > { %2345 = vmatprep.subr.bf16.mxu0 %v2862_v1 }
 0x202   : > { %2346 = vmatpush3.bf16.msra.mxu0 %v1033_v18 }
 0x203   : > { %2351 = vmatprep.subr.bf16.mxu0 %v2862_v1 }
 0x205   : > { %2348 = vmatmul.mubr.msk.bf16.vlgmr.msra.gmra.mrb[8].mxu0 %vm976_vm7, %v962_v19 }
 0x206   : > { %2355 = vmatprep.mubr.msk.bf16.mxu0 %vm2863_vm0, %v2862_v1  ;;  %2352 = vmatpush3.bf16.msra.mxu0 %v1097_v21 }
 0x207   : > { %2353 = vmatprep.subr.bf16.mxu0 %v2862_v1 }
 0x20a   : > { %2354 = vmatpush3.bf16.msra.mxu0 %v1099_v24 }
 0x20b   : > { %2367 = vmatprep.subr.bf16.mxu0 %v2862_v1 }
 0x2d0   : > { %v1014_v27 = vpop.f32.mrb[4].mxu0 }
 0x2d1   : > { %v2341_v28 = vpop.f32.mrb[5].mxu0  ;;  %v1023_v31 = vrot.slane %v1014_v27, %v3237_v16 }
 0x2d2   : > { %v1017_v29 = vpop.f32.mrb[6].mxu0 }
 0x2d3   : > { %v2342_v30 = vpop.f32.mrb[7].mxu0 }
 0x2d8   : > { %v1073_v33 = vpop.f32.mrb[8].mxu0 }
 0x2d9   : > { %v1074_v34 = vadd.f32 %v1073_v33, %v1023_v31  ;;  %v2349_v35 = vpop.f32.mrb[9].mxu0 }
 0x2da   : > { %v1076_v36 = vpop.f32.mrb[10].mxu0 }
 0x2db   : > { %v1083_v37 = vadd.f32 %v1082_v32, %v1074_v34  ;;  %v2350_v38 = vpop.f32.mrb[11].mxu0 }
 0x2dd   : > { %v2236_v39 = vmul.f32 -1.442695, %v1083_v37 }
 0x2df   : > { %2598 = vpow2.f32 %v2236_v39 }
 0x2e9   : > { %v2599_v40 = vpop.eup %2598 }
 0x2ea   : > { %v1087_v41 = vadd.f32 1.0, %v2599_v40 }
 0x2ec   : > { %2600 = vrcp.f32 %v1087_v41 }
 0x2f6   : > { %v2601_v42 = vpop.eup %2600 }
 0x2f7   : > { %v1090_v43 = vmul.f32 %v2601_v42, %v1083_v37 }
 0x2f9   : > { %v1091_v44 = vpack.c.bf16 %v1090_v43, %v1090_v43 }
 0x2fb   : > { %2356 = vmatmul.mubr.msk.bf16.vlgmr.msra.gmra.mrb[12].mxu0 %vm976_vm7, %v1091_v44 }
 0x2fc   : > { %2369 = vmatprep.mubr.msk.bf16.mxu0 %vm2863_vm0, %v2862_v1 }
 0x3ce   : > { %v1139_v49 = vpop.f32.mrb[12].mxu0 }
 0x3cf   : > { %v1140_v50 = vadd.f32 %v1139_v49, %v1095_v48  ;;  %v2357_v51 = vpop.f32.mrb[13].mxu0 }
 0x3d0   : > { %v1142_v52 = vpop.f32.mrb[14].mxu0 }
 0x3d1   : > { %v1146_v53 = vrot.slane %v1140_v50, 7  ;;  %v2358_v54 = vpop.f32.mrb[15].mxu0 }
 0x3d3   : > { %v3321_v55 = vsel %vm1148_vm8, %v674_v25, %v1146_v53  ;;  %v3323_v56 = vsel %vm1148_vm8, %v1146_v53, 0.0 }
 0x3d4   : > { %v1155_v57 = vpack.c.bf16 %v3323_v56, %v3321_v55 }
 0x3d6   : > { %2364 = vmatmul.mubr.msk.bf16.vlgmr.msra.gmra.mrb[4].mxu1 %vm976_vm7, %v1155_v57  ;;  %v615_v57 = vld [vmem:[%s604_s8 + $0x8] sm:$0xff] }
 0x3d7   : > { %2375 = vmatprep.mubr.msk.bf16.mxu1 %vm2863_vm0, %v2862_v1 }
 0x4a9   : > { %v1205_v58 = vpop.f32.mrb[4].mxu1 }
 0x4aa   : > { %v2365_v59 = vpop.f32.mrb[5].mxu1 }
 0x4ab   : > { %v1208_v60 = vpop.f32.mrb[6].mxu1 }
 0x4ac   : > { %v1212_v61 = vpack.c.bf16 %v1208_v60, %v1205_v58  ;;  %v2366_v62 = vpop.f32.mrb[7].mxu1  ;;  %v2579_v58 = vld [vmem:[#allocation10 + $0x8] sm:$0xff]  }
 0x4ae   : > { %1216 = vrot.lane.b32.xlu0 %v1212_v61, %s2871_s30 }
 0x520   : > { %v1217_v63 = vpop.permute.xlu0 %1216 }
 0x521   : > { %v1222_v0 = vsel %vm976_vm7, %v1217_v63, 0 }
 0x522   : > { %2368 = vmatpush3.bf16.xpose.msra.mxu0 %v1222_v0 }
 0x523   : > { %2379 = vmatprep.subr.bf16.mxu0 %v2862_v1 }
 0x529   : > { %2370 = vmatmul.mubr.msk.bf16.vlgmr.msra.gmra.mrb[16].mxu0 %vm976_vm7, %v1212_v61 }
 0x52a   : > { %2380 = vmatpush3.bf16.msra.mxu0 %v3213_v7  ;;  %2383 = vmatprep.mubr.msk.bf16.mxu0 %vm2863_vm0, %v2862_v1 }
 0x52b   : > { %2381 = vmatprep.subr.bf16.mxu0 %v2862_v1 }
 0x52e   : > { %2382 = vmatpush3.bf16.msra.mxu0 %v3221_v10 }
 0x52f   : > { %2395 = vmatprep.subr.bf16.mxu0 %v2862_v1 }
 0x5fc   : > { %v1258_v3 = vpop.f32.mrb[16].mxu0 }
 0x5fd   : > { %v1259_v4 = vadd.f32 %v1258_v3, %v1213_v2  ;;  %v2371_v5 = vpop.f32.mrb[17].mxu0 }
 0x5fe   : > { %v1261_v9 = vpop.f32.mrb[18].mxu0 }
 0x5ff   : > { %v1262_v11 = vadd.f32 %v1261_v9, %v1214_v20  ;;  %v2372_v12 = vpop.f32.mrb[19].mxu0  ;;  %v1265_v13 = vsel %vm960_vm6, %v1259_v4, -inf }
 0x600   : > { %1266 = vmax.xlane.f32.xlu1 %v1265_v13 }
 0x601   : > { %v1268_v14 = vsel %vm960_vm6, %v1262_v11, -inf }
 0x602   : > { %1269 = vmax.xlane.f32.xlu0 %v1268_v14 }
 0x68d   : > { %v1267_v17 = vpop.xlane.xlu1 %1266 }
 0x68e   : > { %v1271_v18 = vsub.f32 %v1259_v4, %v1267_v17 }
 0x68f   : > { %v1270_v19 = vpop.xlane.xlu0 %1269 }
 0x690   : > { %v1273_v21 = vmul.f32 1.442695, %v1271_v18  ;;  %v1272_v22 = vsub.f32 %v1262_v11, %v1270_v19  ;;  %v1417_v18 = vsub.s32 5, %v3234_v15 }
 0x692   : > { %2602 = vpow2.f32 %v1273_v21  ;;  %v1275_v24 = vmul.f32 1.442695, %v1272_v22 }
 0x694   : > { %2604 = vpow2.f32 %v1275_v24  ;;  %v1418_v24 = vrot.slane %v3280_v8, %v1417_v18 }
 0x69c   : > { %v2603_v27 = vpop.eup %2602 }
 0x69d   : > { %v1277_v28 = vsel %vm960_vm6, %v2603_v27, 0.0 }
 0x69e   : > { %v2605_v29 = vpop.eup %2604  ;;  %1278 = vadd.xlane.f32.xlu0 %v1277_v28 }
 0x69f   : > { %v1280_v30 = vsel %vm960_vm6, %v2605_v29, 0.0 }
 0x6a0   : > { %1281 = vadd.xlane.f32.xlu1 %v1280_v30 }
 0x6b4   : > { %1288 = vrot.lane.b32.xlu0 %v1212_v61, %s2873_s26 }
 0x6b8   : > { %1491 = vrot.lane.b32.xlu0 %v3221_v10, %s2871_s30 }
 0x72b   : > { %v1279_v31 = vpop.xlane.xlu0 %1278 }
 0x72c   : > { %2606 = vrcp.f32 %v1279_v31 }
 0x72d   : > { %v1282_v32 = vpop.xlane.xlu1 %1281 }
 0x72e   : > { %2608 = vrcp.f32 %v1282_v32 }
 0x72f   : > { %v1289_v33 = vpop.permute.xlu0 %1288 }
 0x730   : > { %2374 = vmatpush3.bf16.msra.mxu1 %v1289_v33 }
 0x731   : > { %2387 = vmatprep.subr.bf16.mxu1 %v2862_v1 }
 0x733   : > { %v1492_v17 = vpop.permute.xlu0 %1491 }
 0x736   : > { %v2607_v34 = vpop.eup %2606 }
 0x737   : > { %v1285_v36 = vmul.f32 %v2607_v34, %v2603_v27  ;;  %v1423_v27 = vsub.s32 6, %v3234_v15 }
 0x738   : > { %v2609_v35 = vpop.eup %2608 }
 0x739   : > { %v1286_v37 = vmul.f32 %v2609_v35, %v2605_v29  ;;  %v1424_v32 = vrot.slane %v3280_v8, %v1423_v27 }
 0x73b   : > { %v1287_v38 = vpack.c.bf16 %v1286_v37, %v1285_v36 }
 0x73d   : > { %2376 = vmatmul.mubr.msk.bf16.vlgmr.msra.gmra.mrb[8].mxu1 %vm960_vm6, %v1287_v38 }
 0x73e   : > { %2391 = vmatprep.mubr.msk.bf16.mxu1 %vm2863_vm0, %v2862_v1 }
 0x810   : > { %v1328_v39 = vpop.f32.mrb[8].mxu1 }
 0x811   : > { %v2377_v40 = vpop.f32.mrb[9].mxu1 }
 0x812   : > { %v1331_v41 = vpop.f32.mrb[10].mxu1 }
 0x813   : > { %v1335_v42 = vpack.c.bf16 %v1331_v41, %v1328_v39  ;;  %v2378_v43 = vpop.f32.mrb[11].mxu1 }
 0x815   : > { %2384 = vmatmul.mubr.msk.bf16.vlgmr.msra.gmra.mrb[20].mxu0 %vm976_vm7, %v1335_v42 }
 0x816   : > { %2399 = vmatprep.mubr.msk.bf16.mxu0 %vm2863_vm0, %v2862_v1 }
 0x8e8   : > { %v1375_v44 = vpop.f32.mrb[20].mxu0 }
 0x8e9   : > { %v1382_v45 = vadd.f32 %v1375_v44, %v3321_v55  ;;  %v2385_v46 = vpop.f32.mrb[21].mxu0  ;;  %v2578_v55 = vld [vmem:[#allocation10] sm:$0xff]  }
 0x8ea   : > { %v1378_v47 = vpop.f32.mrb[22].mxu0  ;;  %2388 = vmatpush3.bf16.msra.mxu1 %v2578_v55 }
 0x8eb   : > { %v1383_v48 = vadd.f32 %v1378_v47, %v3323_v56  ;;  %v2386_v49 = vpop.f32.mrb[23].mxu0  ;;  %v1384_v50 = vsel %vm976_vm7, %v1382_v45, 0.0  ;;  %v1393_v52 = vmul.f32 %v1382_v45, %v1382_v45  ;;  %2389 = vmatprep.subr.bf16.mxu1 %v2862_v1  ;;  %v614_v56 = vld [vmem:[%s604_s8] sm:$0xff]  ;;  %s3499_s8 = scalar_lea.hbm %s3600_s27, %s2271_s0 }
 0x8ec   : > { %1385 = vadd.xlane.f32.xlu1 %v1384_v50  ;;  %v1431_v59 = vpack.c.bf16 %v615_v57, %v614_v56 }
 0x8ed   : > { %v1387_v51 = vsel %vm976_vm7, %v1383_v48, 0.0  ;;  %v1395_v25 = vsel %vm976_vm7, %v1393_v52, 0.0  ;;  %v1394_v53 = vmul.f32 %v1383_v48, %v1383_v48 }
 0x8ee   : > { %2390 = vmatpush3.bf16.msra.mxu1 %v2579_v58 }
 0x8ef   : > { %v1398_v54 = vsel %vm976_vm7, %v1394_v53, 0.0  ;;  %2403 = vmatprep.subr.bf16.mxu1 %v2862_v1 }
 0x8f0   : > { %1388 = vadd.xlane.f32.xlu1 %v1387_v51 }
 0x8f1   : > { %2392 = vmatmul.mubr.msk.bf16.vlgmr.msra.gmra.mrb[12].mxu1 %vm976_vm7, %v1431_v59 }
 0x8f2   : > { %2405 = vmatprep.mubr.msk.bf16.mxu1 %vm2863_vm0, %v2862_v1 }
 0x8f4   : > { %1396 = vadd.xlane.f32.xlu1 %v1395_v25 }
 0x8f8   : > { %1399 = vadd.xlane.f32.xlu1 %v1398_v54 }
 0x909   : > { %1489 = vrot.lane.b32.xlu1 %v3213_v7, %s2871_s30 }
 0x979   : > { %v1386_v60 = vpop.xlane.xlu1 %1385 }
 0x97a   : > { %v1391_v62 = vmul.f32 0.03125, %v1386_v60 }
 0x97c   : > { %v1405_v0 = vmul.f32 %v1391_v62, %v1391_v62  ;;  %v1403_v19 = vsub.f32 %v1382_v45, %v1391_v62 }
 0x97d   : > { %v1389_v61 = vpop.xlane.xlu1 %1388 }
 0x97e   : > { %v1392_v2 = vmul.f32 0.03125, %v1389_v61 }
 0x980   : > { %v1406_v5 = vmul.f32 %v1392_v2, %v1392_v2  ;;  %v1404_v28 = vsub.f32 %v1383_v48, %v1392_v2 }
 0x981   : > { %v1397_v63 = vpop.xlane.xlu1 %1396 }
 0x982   : > { %v1401_v3 = vmul.f32 0.03125, %v1397_v63 }
 0x984   : > { %v1407_v20 = vsub.f32 %v1401_v3, %v1405_v0 }
 0x985   : > { %v1400_v4 = vpop.xlane.xlu1 %1399 }
 0x986   : > { %v1409_v9 = vadd.f32 1e-05, %v1407_v20  ;;  %v1402_v11 = vmul.f32 0.03125, %v1400_v4 }
 0x988   : > { %2610 = vrsqrt.f32 %v1409_v9  ;;  %v1408_v12 = vsub.f32 %v1402_v11, %v1406_v5 }
 0x989   : > { %v1490_v13 = vpop.permute.xlu1 %1489 }
 0x98a   : > { %v1410_v14 = vadd.f32 1e-05, %v1408_v12  ;;  %2396 = vmatpush3.bf16.msra.mxu0 %v1490_v13 }
 0x98b   : > { %2397 = vmatprep.subr.bf16.mxu0 %v2862_v1 }
 0x98c   : > { %2612 = vrsqrt.f32 %v1410_v14 }
 0x98e   : > { %2398 = vmatpush3.bf16.msra.mxu0 %v1492_v17 }
 0x98f   : > { %2409 = vmatprep.subr.bf16.mxu0 %v2862_v1 }
 0x992   : > { %v2611_v21 = vpop.eup %2610 }
 0x993   : > { %v1413_v22 = vmul.f32 %v2611_v21, %v1403_v19 }
 0x995   : > { %v1419_v31 = vmul.f32 %v1418_v24, %v1413_v22 }
 0x996   : > { %v2613_v29 = vpop.eup %2612 }
 0x997   : > { %v1414_v30 = vmul.f32 %v2613_v29, %v1404_v28  ;;  %v3377_v34 = vadd.f32 %v1424_v32, %v1419_v31 }
 0x999   : > { %v1420_v33 = vmul.f32 %v1418_v24, %v1414_v30 }
 0x99b   : > { %v3379_v35 = vadd.f32 %v1424_v32, %v1420_v33 }
 0x99d   : > { %v1488_v36 = vpack.c.bf16 %v3379_v35, %v3377_v34 }
 0x99f   : > { %2400 = vmatmul.mubr.msk.bf16.vlgmr.msra.gmra.mrb[24].mxu0 %vm976_vm7, %v1488_v36 }
 0x9a0   : > { %2411 = vmatprep.mubr.msk.bf16.mxu0 %vm2863_vm0, %v2862_v1 }
 0x9c4   : > { %v1481_v37 = vpop.f32.mrb[12].mxu1 }
 0x9c5   : > { %v2393_v38 = vpop.f32.mrb[13].mxu1 }
 0x9c6   : > { %v1484_v39 = vpop.f32.mrb[14].mxu1 }
 0x9c7   : > { %v1540_v40 = vpack.c.bf16 %v1484_v39, %v1481_v37  ;;  %v2394_v41 = vpop.f32.mrb[15].mxu1 }
 0x9c9   : > { %v1545_v42 = vsel %vm976_vm7, %v1540_v40, 0 }
 0x9ca   : > { %2404 = vmatpush3.bf16.xpose.msra.mxu1 %v1545_v42 }
 0x9cb   : > { %2415 = vmatprep.subr.bf16.mxu1 %v2862_v1 }
 0xa72   : > { %v1532_v43 = vpop.f32.mrb[24].mxu0 }
 0xa73   : > { %v2401_v44 = vpop.f32.mrb[25].mxu0 }
 0xa74   : > { %v1535_v45 = vpop.f32.mrb[26].mxu0 }
 0xa75   : > { %v1539_v46 = vpack.c.bf16 %v1535_v45, %v1532_v43  ;;  %v2402_v47 = vpop.f32.mrb[27].mxu0 }
 0xa77   : > { %2406 = vmatmul.mubr.msk.bf16.vlgmr.msra.gmra.mrb[16].mxu1 %vm976_vm7, %v1539_v46 }
 0xa78   : > { %2419 = vmatprep.mubr.msk.bf16.mxu1 %vm2863_vm0, %v2862_v1 }
 0xb4a   : > { %v1581_v48 = vpop.f32.mrb[16].mxu1 }
 0xb4b   : > { %v2407_v49 = vpop.f32.mrb[17].mxu1  ;;  %v1588_v50 = vsel %vm960_vm6, %v1581_v48, -inf }
 0xb4c   : > { %1589 = vmax.xlane.f32.xlu0 %v1588_v50  ;;  %v1584_v51 = vpop.f32.mrb[18].mxu1  ;;  %v1744_v50 = vsub.s32 7, %v3234_v15 }
 0xb4d   : > { %v2408_v52 = vpop.f32.mrb[19].mxu1  ;;  %v1591_v25 = vsel %vm960_vm6, %v1584_v51, -inf }
 0xb4e   : > { %1592 = vmax.xlane.f32.xlu1 %v1591_v25  ;;  %v1745_v52 = vrot.slane %v3280_v8, %v1744_v50 }
 0xb5f   : > { %1660 = vrot.lane.b32.xlu1 %v3213_v7, %s2873_s26 }
 0xbd9   : > { %v1590_v53 = vpop.xlane.xlu0 %1589 }
 0xbda   : > { %v1594_v54 = vsub.f32 %v1581_v48, %v1590_v53 }
 0xbdb   : > { %v1593_v55 = vpop.xlane.xlu1 %1592 }
 0xbdc   : > { %v1596_v56 = vmul.f32 1.442695, %v1594_v54  ;;  %v1595_v57 = vsub.f32 %v1584_v51, %v1593_v55 }
 0xbde   : > { %2614 = vpow2.f32 %v1596_v56  ;;  %v1598_v58 = vmul.f32 1.442695, %v1595_v57  ;;  %v1751_v56 = vrot.slane %v3298_v23, %v3237_v16 }
 0xbdf   : > { %v1661_v7 = vpop.permute.xlu1 %1660 }
 0xbe0   : > { %2616 = vpow2.f32 %v1598_v58  ;;  %2416 = vmatpush3.bf16.msra.mxu1 %v1661_v7  ;;  %v2584_v7 = vld [vmem:[%s3598_s14] sm:$0xff]  }
 0xbe1   : > { %2417 = vmatprep.subr.bf16.mxu1 %v2862_v1 }
 0xbe8   : > { %v2615_v59 = vpop.eup %2614 }
 0xbe9   : > { %v1600_v60 = vsel %vm960_vm6, %v2615_v59, 0.0 }
 0xbea   : > { %v2617_v61 = vpop.eup %2616  ;;  %1601 = vadd.xlane.f32.xlu0 %v1600_v60 }
 0xbeb   : > { %v1603_v62 = vsel %vm960_vm6, %v2617_v61, 0.0 }
 0xbee   : > { %1604 = vadd.xlane.f32.xlu0 %v1603_v62 }
 0xc04   : > { %1612 = vrot.lane.b32.xlu0 %v1540_v40, %s2871_s30  ;;  %s2216_s30 = sshll.u32 %s3173_s11, 4 }
 0xc05   : > { %s599_s28 = scalar_lea.vmem [#allocation11], %s2216_s30  ;;  %s2874_s30 = smov [#allocation11]  }
 0xc06   : > { %s2780_s2 = sshll.u32 %s2874_s30, 4  ;;  %s2781_s2 = int_to_ptr.vmem [resolvable:$false] %s2780_s2 }
 0xc07   : > { %s2782_s3 = scalar_lea.vmem %s2781_s2, 512 }
 0xc08   : > { %1662 = vrot.lane.b32.xlu0 %v3221_v10, %s2873_s26  ;;  %s2062_s26 = sshll.u32 %s599_s28, 4  ;;  %s3494_s26 = int_to_ptr.vmem [resolvable:$true] %s2062_s26 }
 0xc09   : > { %s2776_s24 = scalar_lea.vmem %s3494_s26, 256  ;;  %p2783_p3 = scmp.lt.s32.totalorder %s3494_s26, %s2781_s2 }
 0xc0a   : > { %p2777_p6 = scmp.ne.s32.totalorder %s3494_s26, %s2776_s24  ;;  %p2784_p13 = scmp.lt.s32.totalorder %s2782_s3, %s2776_s24 }
 0xc0c   : > { %p2778_p9 = pnand %p2777_p6, %p3601_p7  ;;  %p2785_p0 = por %p2784_p13, %p2783_p3 }
 0xc0e   : > { %p2779_p12 = pneg %p2778_p9 }
 0xc10   : > { %p2786_p2 = pnand %p2785_p0, %p2779_p12 }
 0xc77   : > { %v1602_v63 = vpop.xlane.xlu0 %1601 }
 0xc78   : > { %2618 = vrcp.f32 %v1602_v63  ;;  %v2585_v63 = vld [vmem:[%s3598_s14 + $0x8] sm:$0xff]  }
 0xc7b   : > { %v1605_v0 = vpop.xlane.xlu0 %1604 }
 0xc7c   : > { %2620 = vrcp.f32 %v1605_v0  ;;  %v2586_v0 = vld [vmem:[%s3598_s14 + $0x10] sm:$0xff]  }
 0xc7f   : > { %v1613_v2 = vpop.permute.xlu0 %1612 }
 0xc80   : > { %2410 = vmatpush3.bf16.msra.mxu0 %v1613_v2  ;;  %v2587_v2 = vld [vmem:[%s3598_s14 + $0x18] sm:$0xff]  }
 0xc81   : > { %2423 = vmatprep.subr.bf16.mxu0 %v2862_v1 }
 0xc82   : > { %v2619_v3 = vpop.eup %2618 }
 0xc83   : > { %v1608_v4 = vmul.f32 %v2619_v3, %v2615_v59  ;;  %v1663_v10 = vpop.permute.xlu0 %1662  ;;  %v2588_v3 = vld [vmem:[%s3598_s14 + $0x20] sm:$0xff]  }
 0xc84   : > { %2418 = vmatpush3.bf16.msra.mxu1 %v1663_v10 }
 0xc85   : > { %2431 = vmatprep.subr.bf16.mxu1 %v2862_v1 }
 0xc86   : > { %v2621_v20 = vpop.eup %2620 }
 0xc87   : > { %v1609_v5 = vmul.f32 %v2621_v20, %v2617_v61  ;;  %v2589_v20 = vld [vmem:[%s3598_s14 + $0x28] sm:$0xff]  }
 0xc89   : > { %v1610_v9 = vpack.c.bf16 %v1609_v5, %v1608_v4  ;;  %v2590_v4 = vld [vmem:[%s3598_s14 + $0x30] sm:$0xff]   ;;  %v2591_v5 = vld [vmem:[%s3598_s14 + $0x38] sm:$0xff]  }
 0xc8b   : > { %2412 = vmatmul.mubr.msk.bf16.vlgmr.msra.gmra.mrb[28].mxu0 %vm960_vm6, %v1610_v9  ;;  %v3467_v9 = vld [vmem:[%s3599_s1] sm:$0x3] }
 0xc8c   : > { %2427 = vmatprep.mubr.msk.bf16.mxu0 %vm2863_vm0, %v2862_v1  ;;  %v1758_v10 = vrot.slane %v3467_v9, %v3237_v16 }
 0xd5e   : > { %v1652_v11 = vpop.f32.mrb[28].mxu0 }
 0xd5f   : > { %v2413_v12 = vpop.f32.mrb[29].mxu0 }
 0xd60   : > { %v1655_v13 = vpop.f32.mrb[30].mxu0 }
 0xd61   : > { %v1659_v14 = vpack.c.bf16 %v1655_v13, %v1652_v11  ;;  %v2414_v17 = vpop.f32.mrb[31].mxu0 }
 0xd63   : > { %2420 = vmatmul.mubr.msk.bf16.vlgmr.msra.gmra.mrb[20].mxu1 %vm976_vm7, %v1659_v14 }
 0xd64   : > { %2447 = vmatprep.mubr.msk.bf16.mxu1 %vm2863_vm0, %v2862_v1  ;;  %2432 = vmatpush3.bf16.msra.mxu1 %v2584_v7 }
 0xd65   : > { %2433 = vmatprep.subr.bf16.mxu1 %v2862_v1 }
 0xd68   : > { %2434 = vmatpush3.bf16.msra.mxu1 %v2585_v63 }
 0xd69   : > { %2435 = vmatprep.subr.bf16.mxu1 %v2862_v1 }
 0xd6c   : > { %2436 = vmatpush3.bf16.msra.mxu1 %v2586_v0 }
 0xd6d   : > { %2437 = vmatprep.subr.bf16.mxu1 %v2862_v1 }
 0xd70   : > { %2438 = vmatpush3.bf16.msra.mxu1 %v2587_v2 }
 0xd71   : > { %2439 = vmatprep.subr.bf16.mxu1 %v2862_v1 }
 0xd74   : > { %2440 = vmatpush3.bf16.msra.mxu1 %v2588_v3 }
 0xd75   : > { %2441 = vmatprep.subr.bf16.mxu1 %v2862_v1 }
 0xd78   : > { %2442 = vmatpush3.bf16.msra.mxu1 %v2589_v20 }
 0xd79   : > { %2443 = vmatprep.subr.bf16.mxu1 %v2862_v1 }
 0xd7c   : > { %2444 = vmatpush3.bf16.msra.mxu1 %v2590_v4 }
 0xd7d   : > { %2445 = vmatprep.subr.bf16.mxu1 %v2862_v1 }
 0xd80   : > { %2446 = vmatpush3.bf16.msra.mxu1 %v2591_v5 }
 0xe36   : > { %v1703_v18 = vpop.f32.mrb[20].mxu1 }
 0xe37   : > { %v1710_v19 = vadd.f32 %v1703_v18, %v3377_v34  ;;  %v2421_v21 = vpop.f32.mrb[21].mxu1  ;;  %v2580_v34 = vld [vmem:[%s3597_s17] ss:$8 sps:$4 sm:$0xff]  }
 0xe38   : > { %v1706_v22 = vpop.f32.mrb[22].mxu1  ;;  %2424 = vmatpush3.bf16.msra.mxu0 %v2580_v34 }
 0xe39   : > { %v1711_v24 = vadd.f32 %v1706_v22, %v3379_v35  ;;  %v2422_v27 = vpop.f32.mrb[23].mxu1  ;;  %v1712_v28 = vsel %vm976_vm7, %v1710_v19, 0.0  ;;  %v1720_v31 = vmul.f32 %v1710_v19, %v1710_v19  ;;  %v2582_v35 = vld [vmem:[%s3597_s17 + $0x10] ss:$8 sps:$4 sm:$0xff]   ;;  %2425 = vmatprep.subr.bf16.mxu0 %v2862_v1 }
 0xe3a   : > { %1713 = vadd.xlane.f32.xlu1 %v1712_v28 }
 0xe3b   : > { %v1715_v29 = vsel %vm976_vm7, %v1711_v24, 0.0  ;;  %v1721_v30 = vmul.f32 %v1711_v24, %v1711_v24  ;;  %v1722_v33 = vsel %vm976_vm7, %v1720_v31, 0.0 }
 0xe3c   : > { %1716 = vadd.xlane.f32.xlu0 %v1715_v29  ;;  %2426 = vmatpush3.bf16.msra.mxu0 %v2582_v35 }
 0xe3d   : > { %v1725_v32 = vsel %vm976_vm7, %v1721_v30, 0.0  ;;  %2451 = vmatprep.subr.bf16.mxu0 %v2862_v1 }
 0xe3e   : > { %1726 = vadd.xlane.f32.xlu1 %v1725_v32 }
 0xe40   : > { %1723 = vadd.xlane.f32.xlu0 %v1722_v33 }
 0xec7   : > { %v1714_v36 = vpop.xlane.xlu1 %1713 }
 0xec8   : > { %v1718_v38 = vmul.f32 0.03125, %v1714_v36 }
 0xec9   : > { %v1717_v37 = vpop.xlane.xlu0 %1716 }
 0xeca   : > { %v1719_v39 = vmul.f32 0.03125, %v1717_v37  ;;  %v1732_v44 = vmul.f32 %v1718_v38, %v1718_v38  ;;  %v1730_v53 = vsub.f32 %v1710_v19, %v1718_v38 }
 0xecb   : > { %v1727_v40 = vpop.xlane.xlu1 %1726 }
 0xecc   : > { %v1733_v41 = vmul.f32 %v1719_v39, %v1719_v39  ;;  %v1729_v42 = vmul.f32 0.03125, %v1727_v40  ;;  %v1731_v51 = vsub.f32 %v1711_v24, %v1719_v39 }
 0xecd   : > { %v1724_v43 = vpop.xlane.xlu0 %1723 }
 0xece   : > { %v1735_v45 = vsub.f32 %v1729_v42, %v1733_v41  ;;  %v1728_v46 = vmul.f32 0.03125, %v1724_v43  ;;  %v1943_v41 = vsub.s32 4, %v3234_v15 }
 0xed0   : > { %v1737_v47 = vadd.f32 1e-05, %v1735_v45  ;;  %v1734_v48 = vsub.f32 %v1728_v46, %v1732_v44  ;;  %v1944_v42 = vrot.slane %v3280_v8, %v1943_v41 }
 0xed2   : > { %2622 = vrsqrt.f32 %v1737_v47  ;;  %v1736_v49 = vadd.f32 1e-05, %v1734_v48 }
 0xed4   : > { %2624 = vrsqrt.f32 %v1736_v49 }
 0xedc   : > { %v2623_v25 = vpop.eup %2622 }
 0xedd   : > { %v1741_v54 = vmul.f32 %v2623_v25, %v1731_v51 }
 0xede   : > { %v2625_v55 = vpop.eup %2624 }
 0xedf   : > { %v1740_v57 = vmul.f32 %v2625_v55, %v1730_v53  ;;  %v1747_v58 = vmul.f32 %v1745_v52, %v1741_v54  ;;  %v2592_v54 = vld [vmem:[%s3597_s17 + $0x4] ss:$8 sps:$4 sm:$0xff]   ;;  %v2593_v55 = vld [vmem:[%s3597_s17 + $0x14] ss:$8 sps:$4 sm:$0xff]  }
 0xee1   : > { %v1746_v59 = vmul.f32 %v1745_v52, %v1740_v57  ;;  %v3427_v61 = vadd.f32 %v1751_v56, %v1747_v58 }
 0xee3   : > { %v1752_v60 = vadd.f32 %v1751_v56, %v1746_v59 }
 0xee5   : > { %v1754_v62 = vpack.c.bf16 %v3427_v61, %v1752_v60 }
 0xee7   : > { %2428 = vmatmul.mubr.msk.bf16.vlgmr.msra.gmra.mrb[32].mxu0 %vm976_vm7, %v1754_v62 }
 0xee8   : > { %2455 = vmatprep.mubr.msk.bf16.mxu0 %vm2863_vm0, %v2862_v1  ;;  %2452 = vmatpush3.bf16.msra.mxu0 %v2592_v54 }
 0xee9   : > { %2453 = vmatprep.subr.bf16.mxu0 %v2862_v1  ;;  %v1980_v1 = vrot.slane %v3298_v23, %v3275_v6  ;;  %v1993_v23 = vrot.slane %v3467_v9, %v3275_v6 }
 0xeec   : > { %2454 = vmatpush3.bf16.msra.mxu0 %v2593_v55 }
 0xfba   : > { %v1808_v11 = vpop.f32.mrb[32].mxu0 }
 0xfbb   : > { %v1809_v12 = vadd.f32 %v1808_v11, %v1758_v10  ;;  %v2429_v13 = vpop.f32.mrb[33].mxu0 }
 0xfbc   : > { %v1811_v14 = vpop.f32.mrb[34].mxu0 }
 0xfbd   : > { %v1815_v17 = vmul.f32 %v1809_v12, %v1809_v12  ;;  %v1812_v18 = vadd.f32 %v1811_v14, %v1758_v10  ;;  %v2430_v19 = vpop.f32.mrb[35].mxu0 }
 0xfbf   : > { %v1817_v21 = vmul.f32 %v1815_v17, %v1809_v12  ;;  %v1816_v22 = vmul.f32 %v1812_v18, %v1812_v18 }
 0xfc1   : > { %v1819_v24 = vmul.f32 0.044715, %v1817_v21  ;;  %v1818_v27 = vmul.f32 %v1816_v22, %v1812_v18 }
 0xfc3   : > { %v1821_v28 = vadd.f32 %v1819_v24, %v1809_v12  ;;  %v1820_v29 = vmul.f32 0.044715, %v1818_v27 }
 0xfc5   : > { %v1823_v30 = vmul.f32 0.7978846, %v1821_v28  ;;  %v1822_v31 = vadd.f32 %v1820_v29, %v1812_v18 }
 0xfc7   : > { %2626 = vtanh.f32 %v1823_v30  ;;  %v1824_v32 = vmul.f32 0.7978846, %v1822_v31 }
 0xfc9   : > { %2628 = vtanh.f32 %v1824_v32 }
 0xfd1   : > { %v2627_v33 = vpop.eup %2626 }
 0xfd2   : > { %v1827_v16 = vadd.f32 1.0, %v2627_v33 }
 0xfd3   : > { %v2629_v34 = vpop.eup %2628 }
 0xfd4   : > { %v1829_v35 = vmul.f32 0.5, %v1827_v16  ;;  %v1828_v36 = vadd.f32 1.0, %v2629_v34 }
 0xfd6   : > { %v1830_v37 = vmul.f32 0.5, %v1828_v36  ;;  %v1831_v38 = vmul.f32 %v1829_v35, %v1809_v12 }
 0xfd8   : > { %v1832_v39 = vmul.f32 %v1830_v37, %v1812_v18 }
 0xfda   : > { %v1849_v40 = vpack.c.bf16 %v1832_v39, %v1831_v38 }
 0xfdc   : > { %2448 = vmatmul.mubr.bf16.vlgmr.msra.gmra.mrb[24].mxu1 %v1849_v40 }
0x10af   : > { %v1932_v43 = vpop.f32.mrb[24].mxu1 }
0x10b0   : > { %v1939_v44 = vadd.f32 %v1932_v43, %v1752_v60  ;;  %v2449_v45 = vpop.f32.mrb[25].mxu1 }
0x10b1   : > { %v1935_v46 = vpop.f32.mrb[26].mxu1 }
0x10b2   : > { %v1945_v47 = vadd.f32 %v1944_v42, %v1939_v44  ;;  %v1940_v48 = vadd.f32 %v1935_v46, %v3427_v61  ;;  %v2450_v49 = vpop.f32.mrb[27].mxu1 }
0x10b4   : > { %v1946_v50 = vadd.f32 %v1944_v42, %v1940_v48  ;;  %v1947_v51 = vsel %vm976_vm7, %v1945_v47, 0.0  ;;  %v1955_v52 = vmul.f32 %v1945_v47, %v1945_v47 }
0x10b5   : > { %1948 = vadd.xlane.f32.xlu0 %v1947_v51 }
0x10b6   : > { %v1950_v25 = vsel %vm976_vm7, %v1946_v50, 0.0  ;;  %v1956_v53 = vmul.f32 %v1946_v50, %v1946_v50  ;;  %v1957_v15 = vsel %vm976_vm7, %v1955_v52, 0.0 }
0x10b7   : > { %1951 = vadd.xlane.f32.xlu1 %v1950_v25 }
0x10b8   : > { %v1960_v8 = vsel %vm976_vm7, %v1956_v53, 0.0 }
0x10b9   : > { %1958 = vadd.xlane.f32.xlu0 %v1957_v15 }
0x10bb   : > { %1961 = vadd.xlane.f32.xlu1 %v1960_v8 }
0x1142   : > { %v1949_v56 = vpop.xlane.xlu0 %1948 }
0x1143   : > { %v1953_v57 = vmul.f32 0.03125, %v1949_v56 }
0x1144   : > { %v1952_v58 = vpop.xlane.xlu1 %1951 }
0x1145   : > { %v1954_v59 = vmul.f32 0.03125, %v1952_v58  ;;  %v1967_v61 = vmul.f32 %v1953_v57, %v1953_v57  ;;  %v1965_v5 = vsub.f32 %v1945_v47, %v1953_v57 }
0x1146   : > { %v1959_v60 = vpop.xlane.xlu0 %1958 }
0x1147   : > { %v1963_v62 = vmul.f32 0.03125, %v1959_v60  ;;  %v1968_v63 = vmul.f32 %v1954_v59, %v1954_v59  ;;  %v1966_v11 = vsub.f32 %v1946_v50, %v1954_v59 }
0x1148   : > { %v1962_v7 = vpop.xlane.xlu1 %1961 }
0x1149   : > { %v1969_v0 = vsub.f32 %v1963_v62, %v1967_v61  ;;  %v1964_v2 = vmul.f32 0.03125, %v1962_v7 }
0x114b   : > { %v1971_v3 = vadd.f32 1e-05, %v1969_v0  ;;  %v1970_v20 = vsub.f32 %v1964_v2, %v1968_v63 }
0x114d   : > { %2630 = vrsqrt.f32 %v1971_v3  ;;  %v1972_v4 = vadd.f32 1e-05, %v1970_v20 }
0x114f   : > { %2632 = vrsqrt.f32 %v1972_v4 }
0x1157   : > { %v2631_v10 = vpop.eup %2630 }
0x1158   : > { %v1975_v12 = vmul.f32 %v2631_v10, %v1965_v5 }
0x1159   : > { %v2633_v13 = vpop.eup %2632 }
0x115a   : > { %v1981_v14 = vmul.f32 %v1980_v1, %v1975_v12  ;;  %v1976_v17 = vmul.f32 %v2633_v13, %v1966_v11 }
0x115c   : > { %v1982_v18 = vmul.f32 %v1980_v1, %v1976_v17  ;;  %v1987_v19 = vadd.f32 %v3301_v26, %v1981_v14 }
0x115e   : > { %v1988_v21 = vadd.f32 %v3301_v26, %v1982_v18 }
0x1160   : > { %v1989_v22 = vpack.c.bf16 %v1988_v21, %v1987_v19 }
0x1162   : > { %2456 = vmatmul.mubr.msk.bf16.vlgmr.msra.gmra.mrb[36].mxu0 %vm976_vm7, %v1989_v22 }
0x1235   : > { %v2039_v24 = vpop.f32.mrb[36].mxu0 }
0x1236   : > { %v2040_v27 = vadd.f32 %v2039_v24, %v1993_v23  ;;  %v2457_v28 = vpop.f32.mrb[37].mxu0 }
0x1237   : > { %v2042_v26 = vpop.f32.mrb[38].mxu0 }
0x1238   : > { %2046 = vst [vmem:[%s599_s28] sm:$0xff] %v2040_v27  ;;  %v2043_v6 = vadd.f32 %v2042_v26, %v1993_v23  ;;  %v2458_v9 = vpop.f32.mrb[39].mxu0 }
0x123a   : > { %2047 = vst [vmem:[%s599_s28 + $0x8] sm:$0xff] %v2043_v6 }
0x123b   : > { %2789 = shalt.err (!%p2786_p2)
}
0x123c   : > { %s2790_s28 = scalar_lea.hbm %s3499_s8, 256  ;;  %s2794_s1 = scalar_lea.hbm %s3600_s27, 512 }
0x123d   : > { %p2791_p8 = scmp.ne.s32.totalorder %s3499_s8, %s2790_s28  ;;  %p2795_p11 = scmp.lt.u32.totalorder %s3499_s8, %s3600_s27 }
0x123e   : > { %p2796_p1 = scmp.lt.u32.totalorder %s2794_s1, %s2790_s28  ;;  %p2798_p6 = scmp.lt.u32.totalorder %s2790_s28, %s3499_s8 }
0x123f   : > { %p2792_p4 = pnand %p2791_p8, %p3601_p7 }
0x1240   : > { %p2797_p5 = por %p2796_p1, %p2795_p11 }
0x1241   : > { %p2793_p10 = pneg %p2792_p4 }
0x1242   : > { %p2799_p9 = por %p2798_p6, %p2797_p5 }
0x1244   : > { %p2800_p12 = pnand %p2799_p9, %p2793_p10 }
0x1246   : > { %2803 = shalt.err (!%p2800_p12)
}
0x1247   : > { %s2875_s3 = smov 128   ;;  %s2876_s24 = smov 8  }
0x1248   : > { %2481 = dma.vmem_to_hbm [thread:$0]  (%p3601_p7), %s3494_s26, 256, %s3499_s8, %s2049_s25, %s2875_s3, %s2875_s3, %s2876_s24  }
0x1249 PF: > { %s2077_s0 = sand.u32 1, %s2838_s18   ;;  %p3602_p3 = scmp.ne.s32.totalorder %s3584_s16, 0 }
0x124a   : > { %p3603_p13 = scmp.ge.s32.totalorder %s2850_s21, 2  ;;  %s2078_s28 = scalar_lea.sflag [#allocation4], %s2077_s0 }
0x124c   : > { %p2501_p0 = pnand %p3603_p13, %p3602_p3 }
0x124e   : > { %2833 = dma.done.wait (!%p2501_p0), %s2078_s28, 256  }
0x124f   : > { %2835 = vsyncadd (!%p2501_p0), %s2078_s28, 4294967040  ;;  %p30_p2 = scmp.ge.s32.totalorder %s3097_s23, 4   ;;  %s3604_s18 = smov %s2842_s19 }
0x1250   : > { %s3605_s19 = smov %s2846_s20  ;;  %s3606_s20 = smov %s3108_s13 }
0x1251   : > { %s3607_s21 = smov %s3097_s23  ;;  %32 = sbr.rel (!%p30_p2) target bundleno = 18 (0x12), region = 150 }
0x1258   :  { %2083 = vsyncpa [#allocation3], 1 }
0x1259   :  { %2085 = vsyncpa [#allocation3 + $0x1], 1 }
0x125a   :  { %2086 = vsyncpa [#allocation6], 1 }
0x125b   :  { %2087 = vsyncpa [#allocation9], 1 }
0x125c   :  { %2088 = vsyncpa [#allocation4], 1 }
0x125d   :  { %2090 = vsyncpa [#allocation4 + $0x1], 1 }

</bundles_post_ra>
